<compile_context>
chip_gen: v7x
topology: tpu7x:2x2x1
jax: 0.10.0
libtpu: 0.0.40
codegen_flags: <defaults>
</compile_context>

<pallas_src>
import functools

import numpy as np
import jax
import jax.numpy as jnp
from jax.experimental import pallas as pl
from jax.experimental.pallas import tpu as pltpu


def _tap_masks(H, W):
    """(9, H*W) float 0/1 validity masks for the 3x3 taps (SAME zero padding)."""
    masks = np.zeros((9, H * W), np.float32)
    t = 0
    for dh in (-1, 0, 1):
        for dw in (-1, 0, 1):
            m = np.zeros((H, W), np.float32)
            m[max(0, -dh):min(H, H - dh), max(0, -dw):min(W, W - dw)] = 1.0
            masks[t] = m.reshape(-1)
            t += 1
    return masks


def _fused_cnn_kernel(x_ref, m_ref, w1_ref, b1_ref, w2_ref, b2_ref, w3_ref,
                      b3_ref, o_ref, *, W):
    """Fused conv1(1->C1)+relu, conv2(C1->C2)+relu, conv3(C2->1)+sigmoid.

    Layout: channels on sublanes, flattened (images_per_block * H*W) on lanes.
      x_ref : (1, 1, L)     packed images, flattened spatial
      m_ref : (9, L)        0/1 border masks per tap (tiled per image)
      w1_ref: (C1, 9)       [cout, tap]            b1_ref: (C1, 1)
      w2_ref: (C2, 9*C1)    [cout, tap*C1 + cin]   b2_ref: (C2, 1)
      w3_ref: (9, C2)       [tap, cin]             b3_ref: (1, 1)
      o_ref : (1, 1, L)
    Tap order t = (dh+1)*3 + (dw+1), dh/dw in {-1, 0, 1}.
    """
    L = x_ref.shape[-1]
    masks = m_ref[...]                       # (9, L) 0/1 floats
    shifts = [dh * W + dw for dh in (-1, 0, 1) for dw in (-1, 0, 1)]

    def shifted(v, t):
        # u[:, i] = v[:, i + s_t], zero outside the (per-image) valid window.
        s = shifts[t]
        if s == 0:                           # centre tap: mask is all ones
            return v
        u = pltpu.roll(v, (-s) % L, axis=1)  # lane rotation on the XLU
        return u * masks[t:t + 1, :]         # wrapped / out-of-image lanes -> 0

    x = x_ref[0]                             # (1, L)

    # ---- layer 1: 1 -> C1.  9 single-row tap shifts, then one MXU matmul.
    xpatch = jnp.concatenate([shifted(x, t) for t in range(9)], axis=0)   # (9, L)
    a1 = jnp.dot(w1_ref[...], xpatch, preferred_element_type=jnp.float32)  # (C1, L)
    a1 = jnp.maximum(a1 + b1_ref[...], 0.0)

    # ---- layer 2: C1 -> C2.  im2col (9*C1 = 144 rows) + one MXU matmul (K=144).
    patches = jnp.concatenate([shifted(a1, t) for t in range(9)], axis=0)  # (144, L)
    a2 = jnp.dot(w2_ref[...], patches, preferred_element_type=jnp.float32)  # (C2, L)
    a2 = jnp.maximum(a2 + b2_ref[...], 0.0)

    # ---- layer 3: C2 -> 1.  Channel reduction first on the MXU: y[t] = sum_c
    # w3[t,c] * a2[c].  The tap shift commutes with the channel sum, so the
    # output is just the masked-shift-and-add of nine single rows.
    y = jnp.dot(w3_ref[...], a2, preferred_element_type=jnp.float32)       # (9, L)
    acc = y[4:5, :]                          # centre tap: no shift, no mask
    for t in range(9):
        if t != 4:
            acc = acc + shifted(y[t:t + 1, :], t)
    out = jax.nn.sigmoid(acc + b3_ref[...])  # (1, L)

    o_ref[0] = out.astype(o_ref.dtype)       # lane-dense store


def init_params(key):
    """Deterministic init mimicking PyTorch Conv2d default (uniform +-1/sqrt(fan_in))."""
    def conv_init(k, cin, cout):
        kw, kb = jax.random.split(k)
        bound = 1.0 / jnp.sqrt(cin * 9)
        w = jax.random.uniform(kw, (3, 3, cin, cout), jnp.float32, -bound, bound)
        b = jax.random.uniform(kb, (cout,), jnp.float32, -bound, bound)
        return w, b

    k1, k2, k3 = jax.random.split(key, 3)
    w1, b1 = conv_init(k1, 1, 16)
    w2, b2 = conv_init(k2, 16, 32)
    w3, b3 = conv_init(k3, 32, 1)
    return dict(w1=w1, b1=b1, w2=w2, b2=b2, w3=w3, b3=b3)


@jax.jit
def cnn_cluster_detector(x_nchw, params):
    """Forward pass matching the PyTorch module. Input/output are NCHW (C = 1)."""
    N, Cin, H, W = x_nchw.shape
    assert Cin == 1
    HW = H * W
    C1 = params["w1"].shape[-1]
    C2 = params["w2"].shape[-1]

    # Pack several images side-by-side along the lane axis per grid step.
    b_blk = min(N, 8)                                  # images per grid step
    n_pad = ((N + b_blk - 1) // b_blk) * b_blk
    grid_n = n_pad // b_blk
    L = b_blk * HW

    # NCHW (C=1) -> (grid_n, 1, b_blk*HW): pure reshapes (+ optional zero pad).
    x = x_nchw.reshape(N, HW).astype(jnp.float32)
    if n_pad != N:
        x = jnp.pad(x, ((0, n_pad - N), (0, 0)))
    x = x.reshape(grid_n, 1, L)

    # Border masks (compile-time constants), tiled once per packed image, and
    # HWIO weights repacked for the channels-on-sublanes / spatial-on-lanes layout.
    masks = jnp.asarray(np.tile(_tap_masks(H, W), (1, b_blk)))   # (9, L)
    w1 = params["w1"].reshape(9, C1).T                 # (C1, 9)       [cout, tap]
    b1 = params["b1"].reshape(C1, 1)
    w2 = params["w2"].reshape(9 * C1, C2).T            # (C2, 9*C1)    [cout, tap*C1+cin]
    b2 = params["b2"].reshape(C2, 1)
    w3 = params["w3"].reshape(9, C2)                   # (9, C2)       [tap, cin]
    b3 = params["b3"].reshape(1, 1)

    kern = functools.partial(_fused_cnn_kernel, W=W)
    out = pl.pallas_call(
        kern,
        out_shape=jax.ShapeDtypeStruct((grid_n, 1, L), jnp.float32),
        grid_spec=pltpu.PrefetchScalarGridSpec(
            num_scalar_prefetch=0,
            grid=(grid_n,),                             # one packed block per step
            in_specs=[
                pl.BlockSpec((1, 1, L), lambda n: (n, 0, 0)),    # x
                pl.BlockSpec((9, L), lambda n: (0, 0)),          # tap masks
                pl.BlockSpec((C1, 9), lambda n: (0, 0)),         # w1
                pl.BlockSpec((C1, 1), lambda n: (0, 0)),         # b1
                pl.BlockSpec((C2, 9 * C1), lambda n: (0, 0)),    # w2
                pl.BlockSpec((C2, 1), lambda n: (0, 0)),         # b2
                pl.BlockSpec((9, C2), lambda n: (0, 0)),         # w3
                pl.BlockSpec((1, 1), lambda n: (0, 0)),          # b3
            ],
            out_specs=pl.BlockSpec((1, 1, L), lambda n: (n, 0, 0)),
        ),
        compiler_params=pltpu.CompilerParams(
            dimension_semantics=("parallel",)),         # v7x: blocks split across TCs
    )(x, masks, w1, b1, w2, b2, w3, b3)

    # (grid_n, 1, L) -> NCHW (Cout = 1): pure reshapes + slice off any pad.
    return out.reshape(n_pad, HW)[:N].reshape(N, 1, H, W)


def _ref_forward(x_nchw, params):
    """Pure-JAX reference (lax conv) for correctness check."""
    def conv(x, w, b):
        y = jax.lax.conv_general_dilated(
            x, w, window_strides=(1, 1), padding="SAME",
            dimension_numbers=("NHWC", "HWIO", "NHWC"),
        )
        return y + b

    x = jnp.transpose(x_nchw, (0, 2, 3, 1))
    x = jax.nn.relu(conv(x, params["w1"], params["b1"]))
    x = jax.nn.relu(conv(x, params["w2"], params["b2"]))
    x = jax.nn.sigmoid(conv(x, params["w3"], params["b3"]))
    return jnp.transpose(x, (0, 3, 1, 2))


if __name__ == "__main__":
    key = jax.random.PRNGKey(0)
    kx, kp = jax.random.split(key)
    # Module's conv1 expects 1 input channel: x is NCHW = (2, 1, 16, 16).
    x = jax.random.normal(kx, (2, 1, 16, 16), jnp.float32)
    params = init_params(kp)

    out = cnn_cluster_detector(x, params)
    out = jax.block_until_ready(out)

    ref = _ref_forward(x, params)
    assert out.shape == (2, 1, 16, 16), out.shape
    err = float(jnp.max(jnp.abs(out - ref)))
    assert jnp.allclose(out, ref, atol=1e-5, rtol=1e-5), err
    print("KERNEL_OK")
</pallas_src>

<mosaic_0001>
module attributes {stable_mosaic.version = 11 : i64} {
  func.func @_fused_cnn_kernel(%arg0: i32, %arg1: memref<1x1x512xf32, #tpu.memory_space<vmem>>, %arg2: memref<9x512xf32, #tpu.memory_space<vmem>>, %arg3: memref<16x9xf32, #tpu.memory_space<vmem>>, %arg4: memref<16x1xf32, #tpu.memory_space<vmem>>, %arg5: memref<32x144xf32, #tpu.memory_space<vmem>>, %arg6: memref<32x1xf32, #tpu.memory_space<vmem>>, %arg7: memref<9x32xf32, #tpu.memory_space<vmem>>, %arg8: memref<1x1xf32, #tpu.memory_space<vmem>>, %arg9: memref<1x1x512xf32, #tpu.memory_space<vmem>>) attributes {dimension_semantics = [#tpu.dimension_semantics<parallel>], iteration_bounds = array<i64: 1>, scalar_prefetch = 0 : i64, scratch_operands = 0 : i64, tpu.core_type = #tpu.core_type<tc>, window_params = [{transform_indices = @transform_0, window_bounds = array<i64: 1, 1, 512>}, {pipeline_mode = #tpu.pipeline_mode<synchronous>, transform_indices = @transform_1, window_bounds = array<i64: 9, 512>}, {pipeline_mode = #tpu.pipeline_mode<synchronous>, transform_indices = @transform_2, window_bounds = array<i64: 16, 9>}, {pipeline_mode = #tpu.pipeline_mode<synchronous>, transform_indices = @transform_3, window_bounds = array<i64: 16, 1>}, {pipeline_mode = #tpu.pipeline_mode<synchronous>, transform_indices = @transform_4, window_bounds = array<i64: 32, 144>}, {pipeline_mode = #tpu.pipeline_mode<synchronous>, transform_indices = @transform_5, window_bounds = array<i64: 32, 1>}, {pipeline_mode = #tpu.pipeline_mode<synchronous>, transform_indices = @transform_6, window_bounds = array<i64: 9, 32>}, {pipeline_mode = #tpu.pipeline_mode<synchronous>, transform_indices = @transform_7, window_bounds = array<i64: 1, 1>}, {transform_indices = @transform_8, window_bounds = array<i64: 1, 1, 512>}]} {
    %c0 = arith.constant 0 : index
    %c0_0 = arith.constant 0 : index
    %0 = vector.load %arg2[%c0, %c0_0] : memref<9x512xf32, #tpu.memory_space<vmem>>, vector<9x512xf32>
    %c0_1 = arith.constant 0 : index
    %c0_2 = arith.constant 0 : index
    %c0_3 = arith.constant 0 : index
    %1 = vector.load %arg1[%c0_1, %c0_2, %c0_3] : memref<1x1x512xf32, #tpu.memory_space<vmem>>, vector<1x1x512xf32>
    %2 = vector.shape_cast %1 : vector<1x1x512xf32> to vector<1x512xf32>
    %c17_i32 = arith.constant 17 : i32
    %3 = tpu.dynamic_rotate %2 by %c17_i32 dim 1 : vector<1x512xf32>, i32 -> vector<1x512xf32>
    %4 = vector.extract_strided_slice %0 {offsets = [0, 0], sizes = [1, 512], strides = [1, 1]} : vector<9x512xf32> to vector<1x512xf32>
    %5 = arith.mulf %3, %4 : vector<1x512xf32>
    %c16_i32 = arith.constant 16 : i32
    %6 = tpu.dynamic_rotate %2 by %c16_i32 dim 1 : vector<1x512xf32>, i32 -> vector<1x512xf32>
    %7 = vector.extract_strided_slice %0 {offsets = [1, 0], sizes = [1, 512], strides = [1, 1]} : vector<9x512xf32> to vector<1x512xf32>
    %8 = arith.mulf %6, %7 : vector<1x512xf32>
    %c15_i32 = arith.constant 15 : i32
    %9 = tpu.dynamic_rotate %2 by %c15_i32 dim 1 : vector<1x512xf32>, i32 -> vector<1x512xf32>
    %10 = vector.extract_strided_slice %0 {offsets = [2, 0], sizes = [1, 512], strides = [1, 1]} : vector<9x512xf32> to vector<1x512xf32>
    %11 = arith.mulf %9, %10 : vector<1x512xf32>
    %c1_i32 = arith.constant 1 : i32
    %12 = tpu.dynamic_rotate %2 by %c1_i32 dim 1 : vector<1x512xf32>, i32 -> vector<1x512xf32>
    %13 = vector.extract_strided_slice %0 {offsets = [3, 0], sizes = [1, 512], strides = [1, 1]} : vector<9x512xf32> to vector<1x512xf32>
    %14 = arith.mulf %12, %13 : vector<1x512xf32>
    %c511_i32 = arith.constant 511 : i32
    %15 = tpu.dynamic_rotate %2 by %c511_i32 dim 1 : vector<1x512xf32>, i32 -> vector<1x512xf32>
    %16 = vector.extract_strided_slice %0 {offsets = [5, 0], sizes = [1, 512], strides = [1, 1]} : vector<9x512xf32> to vector<1x512xf32>
    %17 = arith.mulf %15, %16 : vector<1x512xf32>
    %c497_i32 = arith.constant 497 : i32
    %18 = tpu.dynamic_rotate %2 by %c497_i32 dim 1 : vector<1x512xf32>, i32 -> vector<1x512xf32>
    %19 = vector.extract_strided_slice %0 {offsets = [6, 0], sizes = [1, 512], strides = [1, 1]} : vector<9x512xf32> to vector<1x512xf32>
    %20 = arith.mulf %18, %19 : vector<1x512xf32>
    %c496_i32 = arith.constant 496 : i32
    %21 = tpu.dynamic_rotate %2 by %c496_i32 dim 1 : vector<1x512xf32>, i32 -> vector<1x512xf32>
    %22 = vector.extract_strided_slice %0 {offsets = [7, 0], sizes = [1, 512], strides = [1, 1]} : vector<9x512xf32> to vector<1x512xf32>
    %23 = arith.mulf %21, %22 : vector<1x512xf32>
    %c495_i32 = arith.constant 495 : i32
    %24 = tpu.dynamic_rotate %2 by %c495_i32 dim 1 : vector<1x512xf32>, i32 -> vector<1x512xf32>
    %25 = vector.extract_strided_slice %0 {offsets = [8, 0], sizes = [1, 512], strides = [1, 1]} : vector<9x512xf32> to vector<1x512xf32>
    %26 = arith.mulf %24, %25 : vector<1x512xf32>
    %27 = tpu.concatenate %5, %8, %11, %14, %2, %17, %20, %23, %26 in 0 : vector<1x512xf32>, vector<1x512xf32>, vector<1x512xf32>, vector<1x512xf32>, vector<1x512xf32>, vector<1x512xf32>, vector<1x512xf32>, vector<1x512xf32>, vector<1x512xf32> -> vector<9x512xf32>
    %c0_4 = arith.constant 0 : index
    %c0_5 = arith.constant 0 : index
    %28 = vector.load %arg3[%c0_4, %c0_5] : memref<16x9xf32, #tpu.memory_space<vmem>>, vector<16x9xf32>
    %cst = arith.constant dense<0.000000e+00> : vector<16x512xf32>
    %29 = tpu.matmul %28, %27, %cst {dimension_numbers = #tpu.dot_dimension_numbers<[1], [0], [0], [1], [0, 0, 1, 1], [], []>} : vector<16x9xf32>, vector<9x512xf32>, vector<16x512xf32> -> vector<16x512xf32>
    %c0_6 = arith.constant 0 : index
    %c0_7 = arith.constant 0 : index
    %30 = vector.load %arg4[%c0_6, %c0_7] : memref<16x1xf32, #tpu.memory_space<vmem>>, vector<16x1xf32>
    %31 = vector.broadcast %30 : vector<16x1xf32> to vector<16x512xf32>
    %32 = arith.addf %29, %31 : vector<16x512xf32>
    %cst_8 = arith.constant 0.000000e+00 : f32
    %33 = vector.broadcast %cst_8 : f32 to vector<16x512xf32>
    %34 = arith.maximumf %32, %33 : vector<16x512xf32>
    %c17_i32_9 = arith.constant 17 : i32
    %35 = tpu.dynamic_rotate %34 by %c17_i32_9 dim 1 : vector<16x512xf32>, i32 -> vector<16x512xf32>
    %36 = vector.extract_strided_slice %0 {offsets = [0, 0], sizes = [1, 512], strides = [1, 1]} : vector<9x512xf32> to vector<1x512xf32>
    %37 = vector.broadcast %36 : vector<1x512xf32> to vector<16x512xf32>
    %38 = arith.mulf %35, %37 : vector<16x512xf32>
    %c16_i32_10 = arith.constant 16 : i32
    %39 = tpu.dynamic_rotate %34 by %c16_i32_10 dim 1 : vector<16x512xf32>, i32 -> vector<16x512xf32>
    %40 = vector.extract_strided_slice %0 {offsets = [1, 0], sizes = [1, 512], strides = [1, 1]} : vector<9x512xf32> to vector<1x512xf32>
    %41 = vector.broadcast %40 : vector<1x512xf32> to vector<16x512xf32>
    %42 = arith.mulf %39, %41 : vector<16x512xf32>
    %c15_i32_11 = arith.constant 15 : i32
    %43 = tpu.dynamic_rotate %34 by %c15_i32_11 dim 1 : vector<16x512xf32>, i32 -> vector<16x512xf32>
    %44 = vector.extract_strided_slice %0 {offsets = [2, 0], sizes = [1, 512], strides = [1, 1]} : vector<9x512xf32> to vector<1x512xf32>
    %45 = vector.broadcast %44 : vector<1x512xf32> to vector<16x512xf32>
    %46 = arith.mulf %43, %45 : vector<16x512xf32>
    %c1_i32_12 = arith.constant 1 : i32
    %47 = tpu.dynamic_rotate %34 by %c1_i32_12 dim 1 : vector<16x512xf32>, i32 -> vector<16x512xf32>
    %48 = vector.extract_strided_slice %0 {offsets = [3, 0], sizes = [1, 512], strides = [1, 1]} : vector<9x512xf32> to vector<1x512xf32>
    %49 = vector.broadcast %48 : vector<1x512xf32> to vector<16x512xf32>
    %50 = arith.mulf %47, %49 : vector<16x512xf32>
    %c511_i32_13 = arith.constant 511 : i32
    %51 = tpu.dynamic_rotate %34 by %c511_i32_13 dim 1 : vector<16x512xf32>, i32 -> vector<16x512xf32>
    %52 = vector.extract_strided_slice %0 {offsets = [5, 0], sizes = [1, 512], strides = [1, 1]} : vector<9x512xf32> to vector<1x512xf32>
    %53 = vector.broadcast %52 : vector<1x512xf32> to vector<16x512xf32>
    %54 = arith.mulf %51, %53 : vector<16x512xf32>
    %c497_i32_14 = arith.constant 497 : i32
    %55 = tpu.dynamic_rotate %34 by %c497_i32_14 dim 1 : vector<16x512xf32>, i32 -> vector<16x512xf32>
    %56 = vector.extract_strided_slice %0 {offsets = [6, 0], sizes = [1, 512], strides = [1, 1]} : vector<9x512xf32> to vector<1x512xf32>
    %57 = vector.broadcast %56 : vector<1x512xf32> to vector<16x512xf32>
    %58 = arith.mulf %55, %57 : vector<16x512xf32>
    %c496_i32_15 = arith.constant 496 : i32
    %59 = tpu.dynamic_rotate %34 by %c496_i32_15 dim 1 : vector<16x512xf32>, i32 -> vector<16x512xf32>
    %60 = vector.extract_strided_slice %0 {offsets = [7, 0], sizes = [1, 512], strides = [1, 1]} : vector<9x512xf32> to vector<1x512xf32>
    %61 = vector.broadcast %60 : vector<1x512xf32> to vector<16x512xf32>
    %62 = arith.mulf %59, %61 : vector<16x512xf32>
    %c495_i32_16 = arith.constant 495 : i32
    %63 = tpu.dynamic_rotate %34 by %c495_i32_16 dim 1 : vector<16x512xf32>, i32 -> vector<16x512xf32>
    %64 = vector.extract_strided_slice %0 {offsets = [8, 0], sizes = [1, 512], strides = [1, 1]} : vector<9x512xf32> to vector<1x512xf32>
    %65 = vector.broadcast %64 : vector<1x512xf32> to vector<16x512xf32>
    %66 = arith.mulf %63, %65 : vector<16x512xf32>
    %67 = tpu.concatenate %38, %42, %46, %50, %34, %54, %58, %62, %66 in 0 : vector<16x512xf32>, vector<16x512xf32>, vector<16x512xf32>, vector<16x512xf32>, vector<16x512xf32>, vector<16x512xf32>, vector<16x512xf32>, vector<16x512xf32>, vector<16x512xf32> -> vector<144x512xf32>
    %c0_17 = arith.constant 0 : index
    %c0_18 = arith.constant 0 : index
    %68 = vector.load %arg5[%c0_17, %c0_18] : memref<32x144xf32, #tpu.memory_space<vmem>>, vector<32x144xf32>
    %cst_19 = arith.constant dense<0.000000e+00> : vector<32x512xf32>
    %69 = tpu.matmul %68, %67, %cst_19 {dimension_numbers = #tpu.dot_dimension_numbers<[1], [0], [0], [1], [0, 0, 1, 1], [], []>} : vector<32x144xf32>, vector<144x512xf32>, vector<32x512xf32> -> vector<32x512xf32>
    %c0_20 = arith.constant 0 : index
    %c0_21 = arith.constant 0 : index
    %70 = vector.load %arg6[%c0_20, %c0_21] : memref<32x1xf32, #tpu.memory_space<vmem>>, vector<32x1xf32>
    %71 = vector.broadcast %70 : vector<32x1xf32> to vector<32x512xf32>
    %72 = arith.addf %69, %71 : vector<32x512xf32>
    %cst_22 = arith.constant 0.000000e+00 : f32
    %73 = vector.broadcast %cst_22 : f32 to vector<32x512xf32>
    %74 = arith.maximumf %72, %73 : vector<32x512xf32>
    %c0_23 = arith.constant 0 : index
    %c0_24 = arith.constant 0 : index
    %75 = vector.load %arg7[%c0_23, %c0_24] : memref<9x32xf32, #tpu.memory_space<vmem>>, vector<9x32xf32>
    %cst_25 = arith.constant dense<0.000000e+00> : vector<9x512xf32>
    %76 = tpu.matmul %75, %74, %cst_25 {dimension_numbers = #tpu.dot_dimension_numbers<[1], [0], [0], [1], [0, 0, 1, 1], [], []>} : vector<9x32xf32>, vector<32x512xf32>, vector<9x512xf32> -> vector<9x512xf32>
    %77 = vector.extract_strided_slice %76 {offsets = [4, 0], sizes = [1, 512], strides = [1, 1]} : vector<9x512xf32> to vector<1x512xf32>
    %78 = vector.extract_strided_slice %76 {offsets = [0, 0], sizes = [1, 512], strides = [1, 1]} : vector<9x512xf32> to vector<1x512xf32>
    %c17_i32_26 = arith.constant 17 : i32
    %79 = tpu.dynamic_rotate %78 by %c17_i32_26 dim 1 : vector<1x512xf32>, i32 -> vector<1x512xf32>
    %80 = vector.extract_strided_slice %0 {offsets = [0, 0], sizes = [1, 512], strides = [1, 1]} : vector<9x512xf32> to vector<1x512xf32>
    %81 = arith.mulf %79, %80 : vector<1x512xf32>
    %82 = arith.addf %77, %81 : vector<1x512xf32>
    %83 = vector.extract_strided_slice %76 {offsets = [1, 0], sizes = [1, 512], strides = [1, 1]} : vector<9x512xf32> to vector<1x512xf32>
    %c16_i32_27 = arith.constant 16 : i32
    %84 = tpu.dynamic_rotate %83 by %c16_i32_27 dim 1 : vector<1x512xf32>, i32 -> vector<1x512xf32>
    %85 = vector.extract_strided_slice %0 {offsets = [1, 0], sizes = [1, 512], strides = [1, 1]} : vector<9x512xf32> to vector<1x512xf32>
    %86 = arith.mulf %84, %85 : vector<1x512xf32>
    %87 = arith.addf %82, %86 : vector<1x512xf32>
    %88 = vector.extract_strided_slice %76 {offsets = [2, 0], sizes = [1, 512], strides = [1, 1]} : vector<9x512xf32> to vector<1x512xf32>
    %c15_i32_28 = arith.constant 15 : i32
    %89 = tpu.dynamic_rotate %88 by %c15_i32_28 dim 1 : vector<1x512xf32>, i32 -> vector<1x512xf32>
    %90 = vector.extract_strided_slice %0 {offsets = [2, 0], sizes = [1, 512], strides = [1, 1]} : vector<9x512xf32> to vector<1x512xf32>
    %91 = arith.mulf %89, %90 : vector<1x512xf32>
    %92 = arith.addf %87, %91 : vector<1x512xf32>
    %93 = vector.extract_strided_slice %76 {offsets = [3, 0], sizes = [1, 512], strides = [1, 1]} : vector<9x512xf32> to vector<1x512xf32>
    %c1_i32_29 = arith.constant 1 : i32
    %94 = tpu.dynamic_rotate %93 by %c1_i32_29 dim 1 : vector<1x512xf32>, i32 -> vector<1x512xf32>
    %95 = vector.extract_strided_slice %0 {offsets = [3, 0], sizes = [1, 512], strides = [1, 1]} : vector<9x512xf32> to vector<1x512xf32>
    %96 = arith.mulf %94, %95 : vector<1x512xf32>
    %97 = arith.addf %92, %96 : vector<1x512xf32>
    %98 = vector.extract_strided_slice %76 {offsets = [5, 0], sizes = [1, 512], strides = [1, 1]} : vector<9x512xf32> to vector<1x512xf32>
    %c511_i32_30 = arith.constant 511 : i32
    %99 = tpu.dynamic_rotate %98 by %c511_i32_30 dim 1 : vector<1x512xf32>, i32 -> vector<1x512xf32>
    %100 = vector.extract_strided_slice %0 {offsets = [5, 0], sizes = [1, 512], strides = [1, 1]} : vector<9x512xf32> to vector<1x512xf32>
    %101 = arith.mulf %99, %100 : vector<1x512xf32>
    %102 = arith.addf %97, %101 : vector<1x512xf32>
    %103 = vector.extract_strided_slice %76 {offsets = [6, 0], sizes = [1, 512], strides = [1, 1]} : vector<9x512xf32> to vector<1x512xf32>
    %c497_i32_31 = arith.constant 497 : i32
    %104 = tpu.dynamic_rotate %103 by %c497_i32_31 dim 1 : vector<1x512xf32>, i32 -> vector<1x512xf32>
    %105 = vector.extract_strided_slice %0 {offsets = [6, 0], sizes = [1, 512], strides = [1, 1]} : vector<9x512xf32> to vector<1x512xf32>
    %106 = arith.mulf %104, %105 : vector<1x512xf32>
    %107 = arith.addf %102, %106 : vector<1x512xf32>
    %108 = vector.extract_strided_slice %76 {offsets = [7, 0], sizes = [1, 512], strides = [1, 1]} : vector<9x512xf32> to vector<1x512xf32>
    %c496_i32_32 = arith.constant 496 : i32
    %109 = tpu.dynamic_rotate %108 by %c496_i32_32 dim 1 : vector<1x512xf32>, i32 -> vector<1x512xf32>
    %110 = vector.extract_strided_slice %0 {offsets = [7, 0], sizes = [1, 512], strides = [1, 1]} : vector<9x512xf32> to vector<1x512xf32>
    %111 = arith.mulf %109, %110 : vector<1x512xf32>
    %112 = arith.addf %107, %111 : vector<1x512xf32>
    %113 = vector.extract_strided_slice %76 {offsets = [8, 0], sizes = [1, 512], strides = [1, 1]} : vector<9x512xf32> to vector<1x512xf32>
    %c495_i32_33 = arith.constant 495 : i32
    %114 = tpu.dynamic_rotate %113 by %c495_i32_33 dim 1 : vector<1x512xf32>, i32 -> vector<1x512xf32>
    %115 = vector.extract_strided_slice %0 {offsets = [8, 0], sizes = [1, 512], strides = [1, 1]} : vector<9x512xf32> to vector<1x512xf32>
    %116 = arith.mulf %114, %115 : vector<1x512xf32>
    %117 = arith.addf %112, %116 : vector<1x512xf32>
    %c0_34 = arith.constant 0 : index
    %c0_35 = arith.constant 0 : index
    %118 = vector.load %arg8[%c0_34, %c0_35] : memref<1x1xf32, #tpu.memory_space<vmem>>, vector<1x1xf32>
    %119 = vector.broadcast %118 : vector<1x1xf32> to vector<1x512xf32>
    %120 = arith.addf %117, %119 : vector<1x512xf32>
    %121 = arith.negf %120 : vector<1x512xf32>
    %122 = math.exp %121 : vector<1x512xf32>
    %cst_36 = arith.constant 1.000000e+00 : f32
    %123 = vector.broadcast %cst_36 : f32 to vector<1x512xf32>
    %124 = arith.addf %123, %122 : vector<1x512xf32>
    %125 = arith.divf %123, %124 : vector<1x512xf32>
    %c0_37 = arith.constant 0 : index
    %c0_38 = arith.constant 0 : index
    %c0_39 = arith.constant 0 : index
    %126 = vector.load %arg9[%c0_37, %c0_38, %c0_39] : memref<1x1x512xf32, #tpu.memory_space<vmem>>, vector<1x1x512xf32>
    %127 = vector.shape_cast %126 : vector<1x1x512xf32> to vector<1x512xf32>
    %128 = vector.shape_cast %125 : vector<1x512xf32> to vector<1x1x512xf32>
    tpu.vector_store %arg9[%c0_37, %c0_38, %c0_39], %128 {strides = array<i32>} : memref<1x1x512xf32, #tpu.memory_space<vmem>>, vector<1x1x512xf32>,
    return
  }
  func.func @transform_0(%arg0: i32) -> (i32, i32, i32) {
    %c0_i32 = arith.constant 0 : i32
    %c0_i32_0 = arith.constant 0 : i32
    %c0_i32_1 = arith.constant 0 : i32
    return %arg0, %c0_i32, %c0_i32_0 : i32, i32, i32
  }
  func.func @transform_1(%arg0: i32) -> (i32, i32) {
    %c0_i32 = arith.constant 0 : i32
    %c0_i32_0 = arith.constant 0 : i32
    %c0_i32_1 = arith.constant 0 : i32
    return %c0_i32, %c0_i32_0 : i32, i32
  }
  func.func @transform_2(%arg0: i32) -> (i32, i32) {
    %c0_i32 = arith.constant 0 : i32
    %c0_i32_0 = arith.constant 0 : i32
    %c0_i32_1 = arith.constant 0 : i32
    return %c0_i32, %c0_i32_0 : i32, i32
  }
  func.func @transform_3(%arg0: i32) -> (i32, i32) {
    %c0_i32 = arith.constant 0 : i32
    %c0_i32_0 = arith.constant 0 : i32
    %c0_i32_1 = arith.constant 0 : i32
    return %c0_i32, %c0_i32_0 : i32, i32
  }
  func.func @transform_4(%arg0: i32) -> (i32, i32) {
    %c0_i32 = arith.constant 0 : i32
    %c0_i32_0 = arith.constant 0 : i32
    %c0_i32_1 = arith.constant 0 : i32
    return %c0_i32, %c0_i32_0 : i32, i32
  }
  func.func @transform_5(%arg0: i32) -> (i32, i32) {
    %c0_i32 = arith.constant 0 : i32
    %c0_i32_0 = arith.constant 0 : i32
    %c0_i32_1 = arith.constant 0 : i32
    return %c0_i32, %c0_i32_0 : i32, i32
  }
  func.func @transform_6(%arg0: i32) -> (i32, i32) {
    %c0_i32 = arith.constant 0 : i32
    %c0_i32_0 = arith.constant 0 : i32
    %c0_i32_1 = arith.constant 0 : i32
    return %c0_i32, %c0_i32_0 : i32, i32
  }
  func.func @transform_7(%arg0: i32) -> (i32, i32) {
    %c0_i32 = arith.constant 0 : i32
    %c0_i32_0 = arith.constant 0 : i32
    %c0_i32_1 = arith.constant 0 : i32
    return %c0_i32, %c0_i32_0 : i32, i32
  }
  func.func @transform_8(%arg0: i32) -> (i32, i32, i32) {
    %c0_i32 = arith.constant 0 : i32
    %c0_i32_0 = arith.constant 0 : i32
    %c0_i32_1 = arith.constant 0 : i32
    return %arg0, %c0_i32, %c0_i32_0 : i32, i32, i32
  }
}

</mosaic_0001>

<bundles_post_ra>
// kernel: cnn_cluster_detector.1
= control target key start
LH: loop header
LB: loop body
LE: loop exit
PB: predicated region body
PF: predicated region fallthrough
CT: control target
= control target key end

     0   :  { %v3105_v0 = vlaneseq  ;;  %s1885_s29 = smov 16   ;;  %s1887_s30 = smov 17   ;;  %v3130_v11 = vmov 0.0   ;;  %v1894_v12 = vmov 0   ;;  %vm323_vm5 = vcmask 1040384   ;;  %s3096_s0 = inlined_call_operand.vmem [shape: f32[1,1,512], index: 0, kind: input, shape index: {}]   ;;  %s3097_s3 = inlined_call_operand.vmem [shape: f32[16,1], index: 3, kind: input, shape index: {}]   ;;  %s3098_s1 = inlined_call_operand.vmem [shape: f32[9,512], index: 1, kind: input, shape index: {}]   ;;  %s3099_s2 = inlined_call_operand.vmem [shape: f32[16,9], index: 2, kind: input, shape index: {}]   ;;  %s3100_s7 = inlined_call_operand.<no memory space> [shape: f32[1,1], index: 7, kind: input, shape index: {}]   ;;  %s3101_s4 = inlined_call_operand.vmem [shape: f32[32,144], index: 4, kind: input, shape index: {}]   ;;  %s3102_s5 = inlined_call_operand.vmem [shape: f32[32,1], index: 5, kind: input, shape index: {}]   ;;  %s3103_s6 = inlined_call_operand.vmem [shape: f32[9,32], index: 6, kind: input, shape index: {}]   ;;  %s3104_s8 = inlined_call_operand.vmem [shape: f32[1,1,512], index: 8, kind: output, shape index: {}]  }
   0x1   :  { %v39_v2 = vld [vmem:[%s3096_s0] sm:$0xf]  ;;  %s1886_s0 = smov 15   ;;  %s1888_s9 = smov 1   ;;  %455 = vmatprep.mubr.f32.mxu0 %v3130_v11  ;;  %532 = vmatprep.mubr.f32.mxu1 %v3130_v11  ;;  %v361_v14 = vld [vmem:[%s3097_s3 + $0x8] sm:$0xff]  ;;  %v2071_v31 = vld [vmem:[%s3098_s1 + $0x18] sm:$0xff] }
   0x2   :  { %v1943_v1 = vshrl.u32 %v3105_v0, 7  ;;  %s1889_s10 = smov 127   ;;  %s1890_s11 = smov 113   ;;  %1859 = vset.pattern.permute.xlu0 %v1894_v12  ;;  %v360_v13 = vld [vmem:[%s3097_s3] sm:$0xff]  ;;  %1860 = vset.pattern.permute.xlu1 %v1894_v12  ;;  %v2059_v27 = vand.u32 127, %v3105_v0  ;;  %v2076_v32 = vld [vmem:[%s3098_s1 + $0x8] sm:$0xff] }
   0x3   :  { %s1891_s12 = smov 112   ;;  %s1893_s13 = smov 111   ;;  %v2066_v30 = vld [vmem:[%s3098_s1] sm:$0xff]  ;;  %v2081_v33 = vld [vmem:[%s3098_s1 + $0x10] sm:$0xff]  ;;  %v3106_v35 = vrot.slane %v2071_v31, 1  ;;  %v3109_v36 = vrot.slane %v2076_v32, 1 }
   0x4   :  { %v1949_v3 = vsub.s32 2, %v1943_v1  ;;  %v1952_v4 = vsub.s32 0, %v1943_v1  ;;  %v1955_v5 = vsub.s32 3, %v1943_v1  ;;  %v1958_v6 = vsub.s32 1, %v1943_v1 }
   0x5   :  { %vm88_vm0 = vcmp.lt.s32.totalorder %v2059_v27, 16  ;;  %v3107_v34 = vrot.slane %v2066_v30, 1  ;;  %v3108_v39 = vrot.slane %v2081_v33, 1  ;;  %vm117_vm1 = vcmp.lt.s32.totalorder %v2059_v27, 15 }
   0x6   :  { %3144 = vst [vmem:[#allocation3_spill] sm:$0xff] %v1952_v4  ;;  %v1961_v7 = vrot.slane %v39_v2, %v1949_v3  ;;  %v1964_v8 = vrot.slane %v39_v2, %v1952_v4  ;;  %v1971_v9 = vrot.slane %v39_v2, %v1955_v5  ;;  %v1974_v10 = vrot.slane %v39_v2, %v1958_v6 }
   0x7   :  { %v3110_v40 = vrot.slane %v2076_v32, 2  ;;  %v3112_v41 = vrot.slane %v2066_v30, 2  ;;  %v3129_v43 = vrot.slane %v2081_v33, 2  ;;  %v3111_v44 = vrot.slane %v2071_v31, 2 }
   0x8   :  { %84 = vrot.lane.b32.xlu1 %v1961_v7, %s1885_s29  ;;  %80 = vrot.lane.b32.xlu0 %v1964_v8, %s1885_s29  ;;  %vm71_vm2 = vcmp.lt.s32.totalorder %v2059_v27, 17  ;;  %vm142_vm3 = vcmp.lt.s32.totalorder %v2059_v27, 1  ;;  %v3114_v45 = vrot.slane %v2076_v32, 3  ;;  %v3113_v46 = vrot.slane %v2066_v30, 3 }
   0x9   :  { %v3128_v47 = vrot.slane %v2081_v33, 3  ;;  %v3115_v48 = vrot.slane %v2071_v31, 3  ;;  %v3127_v50 = vrot.slane %v2066_v30, 5  ;;  %v3123_v52 = vrot.slane %v2071_v31, 5 }
   0xa   :  { %v3126_v53 = vrot.slane %v2076_v32, 5  ;;  %vm167_vm4 = vcmp.lt.s32.totalorder %v2059_v27, 127  ;;  %v3125_v58 = vrot.slane %v2081_v33, 5  ;;  %v3124_v59 = vrot.slane %v2066_v30, 6 }
   0xb   :  { %v3120_v60 = vrot.slane %v2071_v31, 6  ;;  %v3122_v61 = vrot.slane %v2076_v32, 6  ;;  %v3119_v62 = vrot.slane %v2081_v33, 6  ;;  %v3121_v63 = vrot.slane %v2066_v30, 7 }
   0xc   :  { %86 = vrot.lane.b32.xlu1 %v1971_v9, %s1885_s29  ;;  %82 = vrot.lane.b32.xlu0 %v1974_v10, %s1885_s29  ;;  %v3117_v2 = vrot.slane %v2071_v31, 7  ;;  %v3118_v12 = vrot.slane %v2076_v32, 7  ;;  %vm328_vm6 = vcmask 1041408   ;;  %vm333_vm7 = vcmask 1042432  }
   0xd   :  { %vm192_vm8 = vcmp.lt.s32.totalorder %v2059_v27, 113  ;;  %vm217_vm9 = vcmp.lt.s32.totalorder %v2059_v27, 112  ;;  %vm338_vm10 = vcmask 1043456   ;;  %vm343_vm11 = vcmask 1044480  }
   0xe   :  { %vm242_vm12 = vcmp.lt.s32.totalorder %v2059_v27, 111  ;;  %vm348_vm13 = vcmask 1045504   ;;  %vm353_vm14 = vcmask 1046528   ;;  %vm1895_vm15 = vmmov 1  }
  0x10   :  { %111 = vrot.lane.b32.xlu1 %v1974_v10, %s1886_s0  ;;  %109 = vrot.lane.b32.xlu0 %v1964_v8, %s1886_s0 }
  0x14   :  { %115 = vrot.lane.b32.xlu1 %v1971_v9, %s1886_s0  ;;  %113 = vrot.lane.b32.xlu0 %v1961_v7, %s1886_s0 }
  0x18   :  { %63 = vrot.lane.b32.xlu1 %v1974_v10, %s1887_s30  ;;  %61 = vrot.lane.b32.xlu0 %v1964_v8, %s1887_s30 }
  0x1c   :  { %67 = vrot.lane.b32.xlu1 %v1971_v9, %s1887_s30  ;;  %65 = vrot.lane.b32.xlu0 %v1961_v7, %s1887_s30 }
  0x20   :  { %136 = vrot.lane.b32.xlu1 %v1974_v10, %s1888_s9  ;;  %134 = vrot.lane.b32.xlu0 %v1964_v8, %s1888_s9 }
  0x24   :  { %140 = vrot.lane.b32.xlu1 %v1971_v9, %s1888_s9  ;;  %138 = vrot.lane.b32.xlu0 %v1961_v7, %s1888_s9 }
  0x28   :  { %161 = vrot.lane.b32.xlu1 %v1974_v10, %s1889_s10  ;;  %159 = vrot.lane.b32.xlu0 %v1964_v8, %s1889_s10 }
  0x2c   :  { %165 = vrot.lane.b32.xlu1 %v1971_v9, %s1889_s10  ;;  %163 = vrot.lane.b32.xlu0 %v1961_v7, %s1889_s10 }
  0x30   :  { %186 = vrot.lane.b32.xlu1 %v1974_v10, %s1890_s11  ;;  %184 = vrot.lane.b32.xlu0 %v1964_v8, %s1890_s11 }
  0x34   :  { %190 = vrot.lane.b32.xlu1 %v1971_v9, %s1890_s11  ;;  %188 = vrot.lane.b32.xlu0 %v1961_v7, %s1890_s11 }
  0x38   :  { %211 = vrot.lane.b32.xlu1 %v1974_v10, %s1891_s12  ;;  %209 = vrot.lane.b32.xlu0 %v1964_v8, %s1891_s12 }
  0x3c   :  { %215 = vrot.lane.b32.xlu1 %v1971_v9, %s1891_s12  ;;  %213 = vrot.lane.b32.xlu0 %v1961_v7, %s1891_s12 }
  0x40   :  { %236 = vrot.lane.b32.xlu1 %v1974_v10, %s1893_s13  ;;  %234 = vrot.lane.b32.xlu0 %v1964_v8, %s1893_s13 }
  0x44   :  { %240 = vrot.lane.b32.xlu1 %v1971_v9, %s1893_s13  ;;  %238 = vrot.lane.b32.xlu0 %v1961_v7, %s1893_s13 }
  0x48   :  { %364 = vperm.xlu0 %1859, %v360_v13   ;;  %369 = vperm.xlu1 %1860, %v361_v14  }
  0x7a   :  { %v85_v15 = vpop.permute.xlu1 %84  ;;  %v81_v16 = vpop.permute.xlu0 %80 }
  0x7e   :  { %v87_v17 = vpop.permute.xlu1 %86  ;;  %v83_v18 = vpop.permute.xlu0 %82 }
  0x7f   :  { %v92_v42 = vsel %vm88_vm0, %v87_v17, %v81_v16  ;;  %v89_v54 = vsel %vm88_vm0, %v85_v15, %v87_v17  ;;  %v90_v56 = vsel %vm88_vm0, %v83_v18, %v85_v15  ;;  %v91_v57 = vsel %vm88_vm0, %v81_v16, %v83_v18 }
  0x80   :  { %v2112_v55 = vmul.f32 %v3107_v34, %v92_v42  ;;  %v108_v13 = vmul.f32 %v3106_v35, %v89_v54  ;;  %v106_v14 = vmul.f32 %v3109_v36, %v91_v57  ;;  %v107_v15 = vmul.f32 %v3108_v39, %v90_v56 }
  0x81   :  { %v3116_v18 = vrot.slane %v2081_v33, 7 }
  0x82   :  { %v2044_v19 = vpop.permute.xlu1 %111  ;;  %v110_v20 = vpop.permute.xlu0 %109  ;;  %v255_v42 = vrot.slane %v2112_v55, 7 }
  0x83   :  { %v120_v0 = vsel %vm117_vm1, %v110_v20, %v2044_v19 }
  0x86   :  { %v2046_v21 = vpop.permute.xlu1 %115  ;;  %v2048_v22 = vpop.permute.xlu0 %113 }
  0x87   :  { %v121_v54 = vsel %vm117_vm1, %v2046_v21, %v110_v20  ;;  %v119_v56 = vsel %vm117_vm1, %v2044_v19, %v2048_v22  ;;  %v118_v57 = vsel %vm117_vm1, %v2048_v22, %v2046_v21 }
  0x88   :  { %v130_v34 = vmul.f32 %v3112_v41, %v121_v54  ;;  %v133_v36 = vmul.f32 %v3111_v44, %v118_v57  ;;  %v258_v57 = vrot.slane %v108_v13, 7  ;;  %v256_v44 = vrot.slane %v106_v14, 7 }
  0x8a   :  { %v2050_v23 = vpop.permute.xlu1 %63  ;;  %v2052_v24 = vpop.permute.xlu0 %61  ;;  %v267_v41 = vrot.slane %v130_v34, 6 }
  0x8b   :  { %v74_v55 = vsel %vm71_vm2, %v2052_v24, %v2050_v23 }
  0x8e   :  { %v2054_v25 = vpop.permute.xlu1 %67  ;;  %v2056_v26 = vpop.permute.xlu0 %65 }
  0x8f   :  { %v75_v20 = vsel %vm71_vm2, %v2054_v25, %v2052_v24  ;;  %v73_v19 = vsel %vm71_vm2, %v2050_v23, %v2056_v26  ;;  %v72_v21 = vsel %vm71_vm2, %v2056_v26, %v2054_v25  ;;  %v131_v23 = vmul.f32 %v3110_v40, %v120_v0 }
  0x90   :  { %v132_v25 = vmul.f32 %v3129_v43, %v119_v56  ;;  %v76_v0 = vmul.f32 %v75_v20, %v2066_v30  ;;  %v78_v40 = vmul.f32 %v73_v19, %v2081_v33  ;;  %v79_v54 = vmul.f32 %v72_v21, %v2071_v31 }
  0x91   :  { %v268_v19 = vrot.slane %v131_v23, 6 }
  0x92   :  { %v2061_v28 = vpop.permute.xlu1 %136  ;;  %v135_v29 = vpop.permute.xlu0 %134  ;;  %v269_v21 = vrot.slane %v132_v25, 6  ;;  %v324_v13 = vsel %vm323_vm5, %v76_v0, %v255_v42 }
  0x93   :  { %v145_v22 = vsel %vm142_vm3, %v135_v29, %v2061_v28  ;;  %v329_v42 = vsel %vm328_vm6, %v324_v13, %v267_v41 }
  0x94   :  { %v156_v56 = vmul.f32 %v3114_v45, %v145_v22  ;;  %v270_v45 = vrot.slane %v133_v36, 6 }
  0x96   :  { %v141_v37 = vpop.permute.xlu1 %140  ;;  %v139_v38 = vpop.permute.xlu0 %138  ;;  %v280_v23 = vrot.slane %v156_v56, 5 }
  0x97   :  { %v146_v35 = vsel %vm142_vm3, %v141_v37, %v135_v29  ;;  %v144_v24 = vsel %vm142_vm3, %v2061_v28, %v139_v38  ;;  %v143_v26 = vsel %vm142_vm3, %v139_v38, %v141_v37  ;;  %v77_v28 = vmul.f32 %v74_v55, %v2076_v32 }
  0x98   :  { %v155_v37 = vmul.f32 %v3113_v46, %v146_v35  ;;  %v157_v38 = vmul.f32 %v3128_v47, %v144_v24  ;;  %v257_v55 = vrot.slane %v107_v15, 7  ;;  %v158_v20 = vmul.f32 %v3115_v48, %v143_v26 }
  0x99   :  { %v325_v24 = vsel %vm323_vm5, %v77_v28, %v256_v44  ;;  %v327_v15 = vsel %vm323_vm5, %v79_v54, %v258_v57  ;;  %v580_v47 = vrot.slane %v2066_v30, %v1952_v4 }
  0x9a   :  { %v2101_v49 = vpop.permute.xlu1 %161  ;;  %v2104_v51 = vpop.permute.xlu0 %159  ;;  %v326_v14 = vsel %vm323_vm5, %v78_v40, %v257_v55  ;;  %v279_v34 = vrot.slane %v155_v37, 5  ;;  %v281_v25 = vrot.slane %v157_v38, 5  ;;  %v282_v26 = vrot.slane %v158_v20, 5 }
  0x9b   :  { %v170_v22 = vsel %vm167_vm4, %v2104_v51, %v2101_v49  ;;  %v330_v44 = vsel %vm328_vm6, %v325_v24, %v268_v19  ;;  %v331_v28 = vsel %vm328_vm6, %v326_v14, %v269_v21  ;;  %v332_v56 = vsel %vm328_vm6, %v327_v15, %v270_v45  ;;  %vm1748_vm6 = vmpackc.low %vm323_vm5, %vm1895_vm15 }
  0x9c   :  { %v180_v48 = vmul.f32 %v3127_v50, %v170_v22  ;;  %v335_v41 = vsel %vm333_vm7, %v330_v44, %v280_v23  ;;  %v334_v38 = vsel %vm333_vm7, %v329_v42, %v279_v34  ;;  %v336_v55 = vsel %vm333_vm7, %v331_v28, %v281_v25 }
  0x9d   :  { %v339_v34 = vsel %vm338_vm10, %v334_v38, %v1964_v8  ;;  %v341_v38 = vsel %vm338_vm10, %v336_v55, %v1961_v7  ;;  %vm372_vm5 = vcmask 72704  }
  0x9e   :  { %v2133_v16 = vpop.permute.xlu1 %165  ;;  %v2135_v17 = vpop.permute.xlu0 %163 }
  0x9f   :  { %v171_v36 = vsel %vm167_vm4, %v2133_v16, %v2104_v51  ;;  %v169_v40 = vsel %vm167_vm4, %v2101_v49, %v2135_v17  ;;  %v168_v51 = vsel %vm167_vm4, %v2135_v17, %v2133_v16  ;;  %v337_v16 = vsel %vm333_vm7, %v332_v56, %v282_v26  ;;  %v2275_v56 = vld [vmem:[%s3098_s1 + $0x20] sm:$0x1] }
  0xa0   :  { %v183_v57 = vmul.f32 %v3123_v52, %v171_v36  ;;  %v181_v45 = vmul.f32 %v3126_v53, %v169_v40  ;;  %v291_v17 = vrot.slane %v180_v48, 3  ;;  %v182_v19 = vmul.f32 %v3125_v58, %v168_v51  ;;  %3145 = vst [vmem:[#allocation4_spill] sm:$0xff] %v2275_v56 }
  0xa1   :  { %v340_v51 = vsel %vm338_vm10, %v335_v41, %v1974_v10  ;;  %v2294_v10 = vld [vmem:[%s3098_s1 + $0x28] sm:$0x1]  ;;  %vm969_vm7 = vcmask 130048  }
  0xa2   :  { %v187_v39 = vpop.permute.xlu1 %186  ;;  %v185_v29 = vpop.permute.xlu0 %184  ;;  %v292_v15 = vrot.slane %v181_v45, 3  ;;  %v293_v44 = vrot.slane %v182_v19, 3  ;;  %3147 = vst [vmem:[#allocation6_spill] sm:$0xff] %v2294_v10  ;;  %v2301_v19 = vld [vmem:[%s3098_s1 + $0x38] sm:$0x1] }
  0xa3   :  { %v195_v21 = vsel %vm192_vm8, %v185_v29, %v187_v39  ;;  %3148 = vst [vmem:[#allocation7_spill] sm:$0xff] %v2301_v19 }
  0xa4   :  { %v205_v25 = vmul.f32 %v3124_v59, %v195_v21  ;;  %v584_v59 = vrot.slane %v2076_v32, %v1952_v4 }
  0xa6   :  { %v191_v35 = vpop.permute.xlu1 %190  ;;  %v189_v46 = vpop.permute.xlu0 %188 }
  0xa7   :  { %v196_v49 = vsel %vm192_vm8, %v191_v35, %v185_v29  ;;  %v194_v37 = vsel %vm192_vm8, %v187_v39, %v189_v46  ;;  %v193_v20 = vsel %vm192_vm8, %v189_v46, %v191_v35  ;;  %v294_v29 = vrot.slane %v183_v57, 3 }
  0xa8   :  { %v208_v22 = vmul.f32 %v3120_v60, %v196_v49  ;;  %v206_v24 = vmul.f32 %v3122_v61, %v194_v37  ;;  %v207_v23 = vmul.f32 %v3119_v62, %v193_v20  ;;  %v342_v49 = vsel %vm338_vm10, %v337_v16, %v1971_v9  ;;  %v2289_v20 = vld [vmem:[%s3098_s1 + $0x30] sm:$0x1] }
  0xa9   :  { %v344_v37 = vsel %vm343_vm11, %v339_v34, %v291_v17  ;;  %3146 = vst [vmem:[#allocation5_spill] sm:$0xff] %v2289_v20  ;;  %v345_v9 = vsel %vm343_vm11, %v340_v51, %v292_v15  ;;  %v347_v41 = vsel %vm343_vm11, %v342_v49, %v294_v29  ;;  %v303_v16 = vrot.slane %v205_v25, 2  ;;  %v358_v51 = vld [vmem:[%s3099_s2] sm:$0xff]  ;;  %v359_v49 = vld [vmem:[%s3099_s2 + $0x8] sm:$0xff] }
  0xaa   :  { %v212_v0 = vpop.permute.xlu1 %211  ;;  %v210_v54 = vpop.permute.xlu0 %209  ;;  %v306_v42 = vrot.slane %v208_v22, 2  ;;  %v304_v28 = vrot.slane %v206_v24, 2  ;;  %v305_v57 = vrot.slane %v207_v23, 2  ;;  %vm1178_vm10 = vcmask 261120  }
  0xab   :  { %v220_v48 = vsel %vm217_vm9, %v210_v54, %v212_v0 }
  0xae   :  { %v216_v13 = vpop.permute.xlu1 %215  ;;  %v214_v14 = vpop.permute.xlu0 %213 }
  0xaf   :  { %v221_v46 = vsel %vm217_vm9, %v216_v13, %v210_v54  ;;  %v218_v35 = vsel %vm217_vm9, %v214_v14, %v216_v13  ;;  %v219_v39 = vsel %vm217_vm9, %v212_v0, %v214_v14  ;;  %v230_v0 = vmul.f32 %v3121_v63, %v220_v48 }
  0xb0   :  { %v233_v26 = vmul.f32 %v3117_v2, %v221_v46  ;;  %v231_v36 = vmul.f32 %v3118_v12, %v219_v39  ;;  %v232_v40 = vmul.f32 %v3116_v18, %v218_v35  ;;  %v350_v13 = vsel %vm348_vm13, %v345_v9, %v304_v28 }
  0xb1   :  { %v315_v21 = vrot.slane %v230_v0, 1  ;;  %v352_v14 = vsel %vm348_vm13, %v347_v41, %v306_v42  ;;  %v346_v48 = vsel %vm343_vm11, %v341_v38, %v293_v44 }
  0xb2   :  { %v237_v54 = vpop.permute.xlu1 %236  ;;  %v235_v8 = vpop.permute.xlu0 %234  ;;  %v318_v7 = vrot.slane %v233_v26, 1  ;;  %v316_v55 = vrot.slane %v231_v36, 1  ;;  %v317_v17 = vrot.slane %v232_v40, 1  ;;  %v351_v25 = vsel %vm348_vm13, %v346_v48, %v305_v57 }
  0xb3   :  { %v245_v45 = vsel %vm242_vm12, %v235_v8, %v237_v54  ;;  %v349_v40 = vsel %vm348_vm13, %v344_v37, %v303_v16 }
  0xb4   :  { %v247_v46 = vmul.f32 %v245_v45, %v2275_v56  ;;  %v355_v26 = vsel %vm353_vm14, %v350_v13, %v316_v55  ;;  %v357_v36 = vsel %vm353_vm14, %v352_v14, %v318_v7  ;;  %v356_v44 = vsel %vm353_vm14, %v351_v25, %v317_v17 }
  0xb5   :  { %v354_v0 = vsel %vm353_vm14, %v349_v40, %v315_v21 }
  0xb6   :  { %v241_v22 = vpop.permute.xlu1 %240  ;;  %v239_v24 = vpop.permute.xlu0 %238 }
  0xb7   :  { %v246_v35 = vsel %vm242_vm12, %v241_v22, %v235_v8  ;;  %v243_v39 = vsel %vm242_vm12, %v239_v24, %v241_v22  ;;  %v244_v29 = vsel %vm242_vm12, %v237_v54, %v239_v24  ;;  %v1750_v8 = vpack.c.bf16 %v247_v46, %v354_v0 }
  0xb8   :  { %v249_v15 = vmul.f32 %v243_v39, %v2289_v20  ;;  %v248_v23 = vmul.f32 %v244_v29, %v2294_v10  ;;  %v250_v34 = vmul.f32 %v246_v35, %v2301_v19  ;;  %v13_v22 = vstv %s3100_s7 }
  0xb9   :  { %14 = vst [vmem:[#allocation2] sm:$0x1] %v13_v22  ;;  %v636_v10 = vrot.slane %v2081_v33, %v1958_v6 }
  0xba   :  { %v1747_v42 = vpack.c.bf16 %v248_v23, %v355_v26  ;;  %v1753_v28 = vpack.c.bf16 %v250_v34, %v357_v36  ;;  %v1756_v54 = vpack.c.bf16 %v249_v15, %v356_v44  ;;  %v592_v15 = vrot.slane %v2071_v31, %v1952_v4 }
  0xbc   :  { %1749 = vmatprep.subr.msk.bf16.mxu0 %vm1748_vm6, %v1747_v42  ;;  %1755 = vmatprep.subr.msk.bf16.mxu1 %vm1748_vm6, %v1753_v28 }
  0xbd   :  { %1752 = vmatpush1.bf16.msk.msra.mxu0 %vm1748_vm6, %v1750_v8  ;;  %1758 = vmatpush1.bf16.msk.msra.mxu1 %vm1748_vm6, %v1756_v54  ;;  %v938_v8 = vld [vmem:[%s3101_s4 + $0x8] sm:$0xff] }
  0xc0   :  { %1725 = vmatmul.mubr.msk.f32.vlgmr.msra.gmra.mrb[0].mxu0 %vm372_vm5, %v358_v51  ;;  %1729 = vmatmul.mubr.msk.f32.vlgmr.msra.gmra.mrb[0].mxu1 %vm372_vm5, %v358_v51 }
  0xc1   :  { %461 = vmatprep.mubr.f32.mxu0 %v3130_v11  ;;  %538 = vmatprep.mubr.f32.mxu1 %v3130_v11 }
  0xc4   :  { %1726 = vmatmul.mubr.msk.f32.gmra.mrb[2].mxu0 %vm372_vm5, %v359_v49  ;;  %1730 = vmatmul.mubr.msk.f32.gmra.mrb[2].mxu1 %vm372_vm5, %v359_v49 }
  0xc5   :  { %1731 = vmatprep.mubr.msk.f32.mxu0 %vm969_vm7, %v938_v8  ;;  %1735 = vmatprep.mubr.msk.f32.mxu1 %vm969_vm7, %v938_v8 }
  0xc7   :  { %v365_v37 = vpop.permute.xlu0 %364  ;;  %v370_v7 = vpop.permute.xlu1 %369 }
 0x193   :  { %v457_v38 = vpop.f32.mrb[0].mxu0  ;;  %v534_v57 = vpop.f32.mrb[0].mxu1 }
 0x194   :  { %v458_v45 = vadd.f32 %v457_v38, %v365_v37  ;;  %v459_v9 = vpop.f32.mrb[1].mxu0  ;;  %v535_v41 = vadd.f32 %v534_v57, %v365_v37  ;;  %v536_v16 = vpop.f32.mrb[1].mxu1 }
 0x195   :  { %v460_v23 = vadd.f32 %v459_v9, %v365_v37  ;;  %v537_v25 = vadd.f32 %v536_v16, %v365_v37  ;;  %v945_v37 = vld [vmem:[%s3102_s5] sm:$0xff]  ;;  %v947_v9 = vld [vmem:[%s3102_s5 + $0x10] sm:$0xff] }
 0x196   :  { %v2331_v55 = vmax.f32 %v458_v45, 0.0  ;;  %v2336_v24 = vmax.f32 %v535_v41, 0.0  ;;  %v946_v45 = vld [vmem:[%s3102_s5 + $0x8] sm:$0xff] }
 0x197   :  { %v463_v17 = vpop.f32.mrb[2].mxu0  ;;  %v540_v21 = vpop.f32.mrb[2].mxu1  ;;  %v2408_v34 = vmax.f32 %v460_v23, 0.0  ;;  %v2414_v36 = vmax.f32 %v537_v25, 0.0 }
 0x198   :  { %v464_v13 = vadd.f32 %v463_v17, %v370_v7  ;;  %v541_v14 = vadd.f32 %v540_v21, %v370_v7  ;;  %v465_v48 = vpop.f32.mrb[3].mxu0  ;;  %v542_v46 = vpop.f32.mrb[3].mxu1  ;;  %553 = vrot.lane.b32.xlu1 %v2331_v55, %s1887_s30  ;;  %v1647_v17 = vld [vmem:[#allocation2] sm:$0x1] }
 0x199   :  { %v466_v26 = vadd.f32 %v465_v48, %v370_v7  ;;  %v543_v44 = vadd.f32 %v542_v46, %v370_v7  ;;  %v948_v7 = vld [vmem:[%s3102_s5 + $0x18] sm:$0xff] }
 0x19a   :  { %v2340_v35 = vmax.f32 %v464_v13, 0.0  ;;  %v2342_v39 = vmax.f32 %v541_v14, 0.0 }
 0x19b   :  { %v2416_v40 = vmax.f32 %v466_v26, 0.0  ;;  %v2422_v42 = vmax.f32 %v543_v44, 0.0 }
 0x19c   :  { %555 = vrot.lane.b32.xlu0 %v2340_v35, %s1887_s30  ;;  %561 = vrot.lane.b32.xlu1 %v2336_v24, %s1887_s30 }
 0x1a0   :  { %563 = vrot.lane.b32.xlu0 %v2342_v39, %s1887_s30  ;;  %601 = vrot.lane.b32.xlu1 %v2331_v55, %s1885_s29 }
 0x1a4   :  { %603 = vrot.lane.b32.xlu0 %v2340_v35, %s1885_s29  ;;  %609 = vrot.lane.b32.xlu1 %v2336_v24, %s1885_s29 }
 0x1a8   :  { %611 = vrot.lane.b32.xlu0 %v2342_v39, %s1885_s29  ;;  %649 = vrot.lane.b32.xlu1 %v2331_v55, %s1886_s0 }
 0x1ac   :  { %651 = vrot.lane.b32.xlu0 %v2340_v35, %s1886_s0  ;;  %657 = vrot.lane.b32.xlu1 %v2336_v24, %s1886_s0 }
 0x1b0   :  { %659 = vrot.lane.b32.xlu0 %v2342_v39, %s1886_s0  ;;  %697 = vrot.lane.b32.xlu1 %v2331_v55, %s1888_s9 }
 0x1b4   :  { %699 = vrot.lane.b32.xlu0 %v2340_v35, %s1888_s9  ;;  %705 = vrot.lane.b32.xlu1 %v2336_v24, %s1888_s9 }
 0x1b8   :  { %707 = vrot.lane.b32.xlu0 %v2342_v39, %s1888_s9  ;;  %745 = vrot.lane.b32.xlu1 %v2331_v55, %s1889_s10 }
 0x1bc   :  { %747 = vrot.lane.b32.xlu0 %v2340_v35, %s1889_s10  ;;  %753 = vrot.lane.b32.xlu1 %v2336_v24, %s1889_s10 }
 0x1c0   :  { %755 = vrot.lane.b32.xlu0 %v2342_v39, %s1889_s10  ;;  %793 = vrot.lane.b32.xlu1 %v2331_v55, %s1890_s11 }
 0x1c4   :  { %795 = vrot.lane.b32.xlu0 %v2340_v35, %s1890_s11  ;;  %801 = vrot.lane.b32.xlu1 %v2336_v24, %s1890_s11 }
 0x1c8   :  { %803 = vrot.lane.b32.xlu0 %v2342_v39, %s1890_s11  ;;  %841 = vrot.lane.b32.xlu1 %v2331_v55, %s1891_s12 }
 0x1cc   :  { %843 = vrot.lane.b32.xlu0 %v2340_v35, %s1891_s12  ;;  %849 = vrot.lane.b32.xlu1 %v2336_v24, %s1891_s12 }
 0x1d0   :  { %851 = vrot.lane.b32.xlu0 %v2342_v39, %s1891_s12  ;;  %889 = vrot.lane.b32.xlu1 %v2331_v55, %s1893_s13 }
 0x1d4   :  { %891 = vrot.lane.b32.xlu0 %v2340_v35, %s1893_s13  ;;  %897 = vrot.lane.b32.xlu1 %v2336_v24, %s1893_s13 }
 0x1d8   :  { %899 = vrot.lane.b32.xlu0 %v2342_v39, %s1893_s13  ;;  %557 = vrot.lane.b32.xlu1 %v2408_v34, %s1887_s30 }
 0x1dc   :  { %559 = vrot.lane.b32.xlu0 %v2416_v40, %s1887_s30  ;;  %565 = vrot.lane.b32.xlu1 %v2414_v36, %s1887_s30 }
 0x1e0   :  { %567 = vrot.lane.b32.xlu0 %v2422_v42, %s1887_s30  ;;  %605 = vrot.lane.b32.xlu1 %v2408_v34, %s1885_s29 }
 0x1e4   :  { %607 = vrot.lane.b32.xlu0 %v2416_v40, %s1885_s29  ;;  %613 = vrot.lane.b32.xlu1 %v2414_v36, %s1885_s29 }
 0x1e8   :  { %615 = vrot.lane.b32.xlu0 %v2422_v42, %s1885_s29  ;;  %653 = vrot.lane.b32.xlu1 %v2408_v34, %s1886_s0 }
 0x1ec   :  { %655 = vrot.lane.b32.xlu0 %v2416_v40, %s1886_s0  ;;  %661 = vrot.lane.b32.xlu1 %v2414_v36, %s1886_s0 }
 0x1f0   :  { %663 = vrot.lane.b32.xlu0 %v2422_v42, %s1886_s0  ;;  %701 = vrot.lane.b32.xlu1 %v2408_v34, %s1888_s9 }
 0x1f4   :  { %703 = vrot.lane.b32.xlu0 %v2416_v40, %s1888_s9  ;;  %709 = vrot.lane.b32.xlu1 %v2414_v36, %s1888_s9 }
 0x1f8   :  { %711 = vrot.lane.b32.xlu0 %v2422_v42, %s1888_s9  ;;  %749 = vrot.lane.b32.xlu1 %v2408_v34, %s1889_s10 }
 0x1fc   :  { %751 = vrot.lane.b32.xlu0 %v2416_v40, %s1889_s10  ;;  %757 = vrot.lane.b32.xlu1 %v2414_v36, %s1889_s10 }
 0x200   :  { %759 = vrot.lane.b32.xlu0 %v2422_v42, %s1889_s10  ;;  %797 = vrot.lane.b32.xlu1 %v2408_v34, %s1890_s11 }
 0x204   :  { %799 = vrot.lane.b32.xlu0 %v2416_v40, %s1890_s11  ;;  %805 = vrot.lane.b32.xlu1 %v2414_v36, %s1890_s11 }
 0x208   :  { %807 = vrot.lane.b32.xlu0 %v2422_v42, %s1890_s11  ;;  %845 = vrot.lane.b32.xlu1 %v2408_v34, %s1891_s12 }
 0x20a   :  { %v2468_v28 = vpop.permute.xlu1 %553 }
 0x20c   :  { %847 = vrot.lane.b32.xlu0 %v2416_v40, %s1891_s12  ;;  %853 = vrot.lane.b32.xlu1 %v2414_v36, %s1891_s12 }
 0x20e   :  { %v2474_v0 = vpop.permute.xlu1 %561  ;;  %v2476_v54 = vpop.permute.xlu0 %555 }
 0x210   :  { %855 = vrot.lane.b32.xlu0 %v2422_v42, %s1891_s12  ;;  %893 = vrot.lane.b32.xlu1 %v2408_v34, %s1893_s13 }
 0x212   :  { %v2487_v51 = vpop.permute.xlu1 %601  ;;  %v2489_v49 = vpop.permute.xlu0 %563 }
 0x214   :  { %895 = vrot.lane.b32.xlu0 %v2416_v40, %s1893_s13  ;;  %901 = vrot.lane.b32.xlu1 %v2414_v36, %s1893_s13 }
 0x216   :  { %v2498_v38 = vpop.permute.xlu1 %609  ;;  %v2500_v57 = vpop.permute.xlu0 %603 }
 0x218   :  { %903 = vrot.lane.b32.xlu0 %v2422_v42, %s1893_s13  ;;  %951 = vperm.xlu1 %1860, %v945_v37  }
 0x21a   :  { %v2510_v41 = vpop.permute.xlu1 %649  ;;  %v2512_v16 = vpop.permute.xlu0 %611 }
 0x21c   :  { %956 = vperm.xlu0 %1859, %v946_v45   ;;  %961 = vperm.xlu1 %1860, %v947_v9  }
 0x21e   :  { %v2517_v21 = vpop.permute.xlu1 %657  ;;  %v2519_v22 = vpop.permute.xlu0 %651 }
 0x220   :  { %966 = vperm.xlu0 %1859, %v948_v7   ;;  %1650 = vperm.xlu1 %1860, %v1647_v17  }
 0x222   :  { %v2521_v13 = vpop.permute.xlu1 %697  ;;  %v2523_v14 = vpop.permute.xlu0 %659 }
 0x226   :  { %v2525_v48 = vpop.permute.xlu1 %705  ;;  %v2527_v46 = vpop.permute.xlu0 %699 }
 0x22a   :  { %v2529_v23 = vpop.permute.xlu1 %745  ;;  %v2531_v25 = vpop.permute.xlu0 %707 }
 0x22e   :  { %v2533_v26 = vpop.permute.xlu1 %753  ;;  %v2535_v44 = vpop.permute.xlu0 %747 }
 0x232   :  { %v2537_v8 = vpop.permute.xlu1 %793  ;;  %v2539_v37 = vpop.permute.xlu0 %755 }
 0x236   :  { %v2541_v45 = vpop.permute.xlu1 %801  ;;  %v2543_v9 = vpop.permute.xlu0 %795 }
 0x23a   :  { %v2545_v7 = vpop.permute.xlu1 %841  ;;  %v2547_v17 = vpop.permute.xlu0 %803 }
 0x23e   :  { %v2549_v18 = vpop.permute.xlu1 %849  ;;  %v2551_v2 = vpop.permute.xlu0 %843 }
 0x23f   :  { %3149 = vst [vmem:[#allocation8_spill] sm:$0xff] %v2551_v2 }
 0x242   :  { %v2553_v12 = vpop.permute.xlu1 %889  ;;  %v2555_v62 = vpop.permute.xlu0 %851 }
 0x243   :  { %3150 = vst [vmem:[#allocation9_spill] sm:$0xff] %v2553_v12  ;;  %3151 = vst [vmem:[#allocation10_spill] sm:$0xff] %v2555_v62  ;;  %v632_v12 = vrot.slane %v2076_v32, %v1958_v6 }
 0x246   :  { %v2557_v60 = vpop.permute.xlu1 %897  ;;  %v2559_v63 = vpop.permute.xlu0 %891 }
 0x247   :  { %3152 = vst [vmem:[#allocation11_spill] sm:$0xff] %v2557_v60  ;;  %3153 = vst [vmem:[#allocation12_spill] sm:$0xff] %v2559_v63 }
 0x24a   :  { %v558_v61 = vpop.permute.xlu1 %557  ;;  %v2561_v52 = vpop.permute.xlu0 %899 }
 0x24b   :  { %3154 = vst [vmem:[#allocation13_spill] sm:$0xff] %v2561_v52  ;;  %v573_v58 = vsel %vm71_vm2, %v2468_v28, %v558_v61  ;;  %v588_v52 = vrot.slane %v2081_v33, %v1952_v4 }
 0x24c   :  { %v594_v11 = vmul.f32 %v584_v59, %v573_v58  ;;  %v571_v58 = vsel %vm71_vm2, %v558_v61, %v2474_v0 }
 0x24d   :  { %v595_v2 = vmul.f32 %v588_v52, %v571_v58 }
 0x24e   :  { %v566_v53 = vpop.permute.xlu1 %565  ;;  %v560_v50 = vpop.permute.xlu0 %559 }
 0x24f   :  { %v574_v43 = vsel %vm71_vm2, %v2476_v54, %v560_v50  ;;  %v572_v29 = vsel %vm71_vm2, %v560_v50, %v2489_v49  ;;  %v569_v19 = vsel %vm71_vm2, %v2474_v0, %v566_v53  ;;  %v575_v20 = vsel %vm71_vm2, %v566_v53, %v2468_v28 }
 0x250   :  { %v598_v63 = vmul.f32 %v584_v59, %v574_v43  ;;  %v599_v60 = vmul.f32 %v588_v52, %v572_v29  ;;  %v593_v28 = vmul.f32 %v580_v47, %v575_v20  ;;  %v596_v61 = vmul.f32 %v592_v15, %v569_v19 }
 0x252   :  { %v606_v50 = vpop.permute.xlu1 %605  ;;  %v568_v43 = vpop.permute.xlu0 %567  ;;  %v1759_v59 = vpack.c.bf16 %v598_v63, %v594_v11  ;;  %v1797_v19 = vpack.c.bf16 %v599_v60, %v595_v2 }
 0x253   :  { %v570_v56 = vsel %vm71_vm2, %v2489_v49, %v568_v43  ;;  %v576_v53 = vsel %vm71_vm2, %v568_v43, %v2476_v54  ;;  %v619_v11 = vsel %vm88_vm0, %v606_v50, %v2498_v38  ;;  %v621_v63 = vsel %vm88_vm0, %v2487_v51, %v606_v50 }
 0x254   :  { %v597_v0 = vmul.f32 %v580_v47, %v576_v53  ;;  %v600_v4 = vmul.f32 %v592_v15, %v570_v56  ;;  %1760 = vmatprep.subr.bf16.mxu0 %v1759_v59  ;;  %v628_v49 = vrot.slane %v2066_v30, %v1958_v6  ;;  %v640_v47 = vrot.slane %v2071_v31, %v1958_v6 }
 0x255   :  { %v642_v15 = vmul.f32 %v632_v12, %v621_v63  ;;  %v643_v58 = vmul.f32 %v636_v10, %v619_v11 }
 0x256   :  { %v1761_v29 = vpack.c.bf16 %v597_v0, %v593_v28  ;;  %v614_v62 = vpop.permute.xlu1 %613  ;;  %v608_v54 = vpop.permute.xlu0 %607  ;;  %v1795_v20 = vpack.c.bf16 %v600_v4, %v596_v61  ;;  %v680_v28 = vrot.slane %v2076_v32, %v1949_v3 }
 0x257   :  { %v620_v52 = vsel %vm88_vm0, %v608_v54, %v2512_v16  ;;  %v622_v56 = vsel %vm88_vm0, %v2500_v57, %v608_v54  ;;  %v617_v4 = vsel %vm88_vm0, %v2498_v38, %v614_v62  ;;  %v623_v6 = vsel %vm88_vm0, %v614_v62, %v2487_v51 }
 0x258   :  { %v646_v50 = vmul.f32 %v632_v12, %v622_v56  ;;  %v647_v43 = vmul.f32 %v636_v10, %v620_v52  ;;  %1762 = vmatpush1.bf16.msra.mxu0 %v1761_v29  ;;  %1796 = vmatprep.subr.bf16.mxu1 %v1795_v20  ;;  %v684_v12 = vrot.slane %v2081_v33, %v1949_v3 }
 0x259   :  { %1798 = vmatpush1.bf16.msra.mxu1 %v1797_v19  ;;  %v641_v51 = vmul.f32 %v628_v49, %v623_v6  ;;  %v644_v38 = vmul.f32 %v640_v47, %v617_v4 }
 0x25a   :  { %v1801_v60 = vpack.c.bf16 %v647_v43, %v643_v58  ;;  %v654_v2 = vpop.permute.xlu1 %653  ;;  %v616_v59 = vpop.permute.xlu0 %615  ;;  %v1763_v53 = vpack.c.bf16 %v646_v50, %v642_v15 }
 0x25b   :  { %v618_v10 = vsel %vm88_vm0, %v2512_v16, %v616_v59  ;;  %v624_v62 = vsel %vm88_vm0, %v616_v59, %v2500_v57  ;;  %v667_v11 = vsel %vm117_vm1, %v654_v2, %v2517_v21  ;;  %v669_v63 = vsel %vm117_vm1, %v2510_v41, %v654_v2 }
 0x25c   :  { %v645_v61 = vmul.f32 %v628_v49, %v624_v62  ;;  %v648_v0 = vmul.f32 %v640_v47, %v618_v10  ;;  %1764 = vmatprep.subr.bf16.mxu0 %v1763_v53  ;;  %v676_v57 = vrot.slane %v2066_v30, %v1949_v3  ;;  %v688_v49 = vrot.slane %v2071_v31, %v1949_v3 }
 0x25d   :  { %v690_v52 = vmul.f32 %v680_v28, %v669_v63  ;;  %v691_v56 = vmul.f32 %v684_v12, %v667_v11  ;;  %v728_v59 = vrot.slane %v2076_v32, %v1955_v5  ;;  %v732_v53 = vrot.slane %v2081_v33, %v1955_v5 }
 0x25e   :  { %v1765_v29 = vpack.c.bf16 %v645_v61, %v641_v51  ;;  %v662_v54 = vpop.permute.xlu1 %661  ;;  %v656_v16 = vpop.permute.xlu0 %655  ;;  %v1799_v20 = vpack.c.bf16 %v648_v0, %v644_v38  ;;  %v736_v11 = vrot.slane %v2071_v31, %v1955_v5 }
 0x25f   :  { %v668_v19 = vsel %vm117_vm1, %v656_v16, %v2523_v14  ;;  %v670_v47 = vsel %vm117_vm1, %v2519_v22, %v656_v16  ;;  %v665_v50 = vsel %vm117_vm1, %v2517_v21, %v662_v54  ;;  %v671_v3 = vsel %vm117_vm1, %v662_v54, %v2510_v41 }
 0x260   :  { %v694_v15 = vmul.f32 %v680_v28, %v670_v47  ;;  %v695_v58 = vmul.f32 %v684_v12, %v668_v19  ;;  %1766 = vmatpush1.bf16.msra.mxu0 %v1765_v29  ;;  %1800 = vmatprep.subr.bf16.mxu1 %v1799_v20  ;;  %v689_v28 = vmul.f32 %v676_v57, %v671_v3  ;;  %v771_v54 = vsub.s32 5, %v1943_v1 }
 0x261   :  { %1802 = vmatpush1.bf16.msra.mxu1 %v1801_v60  ;;  %v692_v12 = vmul.f32 %v688_v49, %v665_v50 }
 0x262   :  { %v1805_v43 = vpack.c.bf16 %v695_v58, %v691_v56  ;;  %v702_v4 = vpop.permute.xlu1 %701  ;;  %v664_v6 = vpop.permute.xlu0 %663  ;;  %v1767_v2 = vpack.c.bf16 %v694_v15, %v690_v52  ;;  %v776_v58 = vrot.slane %v2076_v32, %v771_v54 }
 0x263   :  { %v666_v21 = vsel %vm117_vm1, %v2523_v14, %v664_v6  ;;  %v672_v41 = vsel %vm117_vm1, %v664_v6, %v2519_v22  ;;  %v715_v62 = vsel %vm142_vm3, %v702_v4, %v2525_v48  ;;  %v717_v51 = vsel %vm142_vm3, %v2521_v13, %v702_v4 }
 0x264   :  { %v693_v60 = vmul.f32 %v676_v57, %v672_v41  ;;  %v696_v10 = vmul.f32 %v688_v49, %v666_v21  ;;  %1768 = vmatprep.subr.bf16.mxu0 %v1767_v2  ;;  %v724_v14 = vrot.slane %v2066_v30, %v1955_v5  ;;  %v738_v16 = vmul.f32 %v728_v59, %v717_v51 }
 0x265   :  { %v739_v20 = vmul.f32 %v732_v53, %v715_v62  ;;  %v819_v41 = vsub.s32 6, %v1943_v1 }
 0x266   :  { %v1769_v38 = vpack.c.bf16 %v693_v60, %v689_v28  ;;  %v710_v61 = vpop.permute.xlu1 %709  ;;  %v704_v0 = vpop.permute.xlu0 %703  ;;  %v1803_v22 = vpack.c.bf16 %v696_v10, %v692_v12  ;;  %v780_v28 = vrot.slane %v2081_v33, %v771_v54 }
 0x267   :  { %v716_v63 = vsel %vm142_vm3, %v704_v0, %v2531_v25  ;;  %v718_v29 = vsel %vm142_vm3, %v2527_v46, %v704_v0  ;;  %v713_v19 = vsel %vm142_vm3, %v2525_v48, %v710_v61  ;;  %v719_v5 = vsel %vm142_vm3, %v710_v61, %v2521_v13 }
 0x268   :  { %v742_v57 = vmul.f32 %v728_v59, %v718_v29  ;;  %v743_v49 = vmul.f32 %v732_v53, %v716_v63  ;;  %1770 = vmatpush1.bf16.msra.mxu0 %v1769_v38  ;;  %1804 = vmatprep.subr.bf16.mxu1 %v1803_v22  ;;  %v737_v3 = vmul.f32 %v724_v14, %v719_v5 }
 0x269   :  { %1806 = vmatpush1.bf16.msra.mxu1 %v1805_v43  ;;  %v740_v4 = vmul.f32 %v736_v11, %v713_v19  ;;  %v820_v0 = vrot.slane %v2066_v30, %v819_v41 }
 0x26a   :  { %v1809_v47 = vpack.c.bf16 %v743_v49, %v739_v20  ;;  %v750_v52 = vpop.permute.xlu1 %749  ;;  %v712_v56 = vpop.permute.xlu0 %711  ;;  %v1771_v15 = vpack.c.bf16 %v742_v57, %v738_v16  ;;  %v3155_v57 = vpack.c.bf16 %v2340_v35, %v2331_v55 }
 0x26b   :  { %v714_v50 = vsel %vm142_vm3, %v2531_v25, %v712_v56  ;;  %v720_v48 = vsel %vm142_vm3, %v712_v56, %v2527_v46  ;;  %v763_v43 = vsel %vm167_vm4, %v750_v52, %v2533_v26  ;;  %v1775_v25 = vpack.c.bf16 %v2416_v40, %v2408_v34  ;;  %v2743_v56 = vld [vmem:[%s3098_s1 + $0x18] sm:$0xff] }
 0x26c   :  { %v741_v6 = vmul.f32 %v724_v14, %v720_v48  ;;  %v744_v13 = vmul.f32 %v736_v11, %v714_v50  ;;  %1772 = vmatprep.subr.bf16.mxu0 %v1771_v15  ;;  %v772_v46 = vrot.slane %v2066_v30, %v771_v54  ;;  %v765_v10 = vsel %vm167_vm4, %v2529_v23, %v750_v52 }
 0x26d   :  { %v786_v62 = vmul.f32 %v776_v58, %v763_v43  ;;  %v784_v34 = vrot.slane %v2071_v31, %v771_v54  ;;  %v1811_v14 = vpack.c.bf16 %v2422_v42, %v2414_v36  ;;  %v824_v54 = vrot.slane %v2076_v32, %v819_v41 }
 0x26e   :  { %v1773_v2 = vpack.c.bf16 %v741_v6, %v737_v3  ;;  %v758_v59 = vpop.permute.xlu1 %757  ;;  %v752_v53 = vpop.permute.xlu0 %751  ;;  %v1807_v21 = vpack.c.bf16 %v744_v13, %v740_v4  ;;  %v785_v29 = vmul.f32 %v772_v46, %v765_v10  ;;  %v832_v15 = vrot.slane %v2743_v56, %v819_v41 }
 0x26f   :  { %v764_v12 = vsel %vm167_vm4, %v752_v53, %v2539_v37  ;;  %v766_v60 = vsel %vm167_vm4, %v2535_v44, %v752_v53  ;;  %v761_v51 = vsel %vm167_vm4, %v2533_v26, %v758_v59  ;;  %v767_v38 = vsel %vm167_vm4, %v758_v59, %v2529_v23 }
 0x270   :  { %v790_v40 = vmul.f32 %v776_v58, %v764_v12  ;;  %1774 = vmatpush1.bf16.msra.mxu0 %v1773_v2  ;;  %1808 = vmatprep.subr.bf16.mxu1 %v1807_v21  ;;  %v789_v61 = vmul.f32 %v772_v46, %v766_v60  ;;  %v787_v36 = vmul.f32 %v780_v28, %v761_v51  ;;  %v2762_v21 = vld [vmem:[%s3098_s1] sm:$0xff] }
 0x271   :  { %1776 = vmatprep.subr.bf16.mxu0 %v1775_v25  ;;  %1810 = vmatpush1.bf16.msra.mxu1 %v1809_v47  ;;  %v788_v42 = vmul.f32 %v784_v34, %v767_v38  ;;  %v828_v47 = vrot.slane %v2081_v33, %v819_v41 }
 0x272   :  { %v798_v22 = vpop.permute.xlu1 %797  ;;  %v760_v11 = vpop.permute.xlu0 %759  ;;  %v1779_v63 = vpack.c.bf16 %v790_v40, %v786_v62  ;;  %1812 = vmatprep.subr.bf16.mxu1 %v1811_v14  ;;  %v1781_v19 = vpack.c.bf16 %v789_v61, %v785_v29 }
 0x273   :  { %v762_v23 = vsel %vm167_vm4, %v2539_v37, %v760_v11  ;;  %v768_v26 = vsel %vm167_vm4, %v760_v11, %v2535_v44  ;;  %v811_v49 = vsel %vm192_vm8, %v798_v22, %v2541_v45  ;;  %v813_v37 = vsel %vm192_vm8, %v2537_v8, %v798_v22  ;;  %v3158_v11 = vld [vmem:[#allocation8_spill] sm:$0xff] }
 0x274   :  { %v791_v16 = vmul.f32 %v780_v28, %v762_v23  ;;  %v792_v20 = vmul.f32 %v784_v34, %v768_v26  ;;  %1778 = vmatpush1.bf16.msra.mxu0 %v3155_v57  ;;  %v3156_v44 = vpack.c.bf16 %v2342_v39, %v2336_v24  ;;  %v867_v39 = vsub.s32 7, %v1943_v1 }
 0x275   :  { %1780 = vmatprep.subr.bf16.mxu0 %v1779_v63  ;;  %v833_v50 = vmul.f32 %v820_v0, %v813_v37  ;;  %v834_v48 = vmul.f32 %v824_v54, %v811_v49  ;;  %v3159_v37 = vld [vmem:[#allocation3_spill] sm:$0xff] }
 0x276   :  { %v1817_v5 = vpack.c.bf16 %v791_v16, %v787_v36  ;;  %1814 = vmatpush1.bf16.msra.mxu1 %v3156_v44  ;;  %v806_v52 = vpop.permute.xlu1 %805  ;;  %v800_v55 = vpop.permute.xlu0 %799  ;;  %v1815_v35 = vpack.c.bf16 %v792_v20, %v788_v42  ;;  %v868_v25 = vrot.slane %v2762_v21, %v867_v39  ;;  %v880_v61 = vrot.slane %v2743_v56, %v867_v39  ;;  %v3161_v44 = vld [vmem:[#allocation6_spill] sm:$0xff] }
 0x277   :  { %v812_v58 = vsel %vm192_vm8, %v800_v55, %v2547_v17  ;;  %v814_v24 = vsel %vm192_vm8, %v2543_v9, %v800_v55  ;;  %v809_v6 = vsel %vm192_vm8, %v2541_v45, %v806_v52  ;;  %v815_v13 = vsel %vm192_vm8, %v806_v52, %v2537_v8  ;;  %v2768_v45 = vld [vmem:[%s3098_s1 + $0x8] sm:$0xff] }
 0x278   :  { %v837_v3 = vmul.f32 %v820_v0, %v814_v24  ;;  %v838_v4 = vmul.f32 %v824_v54, %v812_v58  ;;  %1782 = vmatpush1.bf16.msra.mxu0 %v1781_v19  ;;  %1816 = vmatprep.subr.bf16.mxu1 %v1815_v35  ;;  %v872_v8 = vrot.slane %v2768_v45, %v867_v39  ;;  %v3157_v0 = vld [vmem:[#allocation10_spill] sm:$0xff]  ;;  %v3160_v19 = vld [vmem:[#allocation4_spill] sm:$0xff]  ;;  %v3162_v58 = vld [vmem:[#allocation11_spill] sm:$0xff] }
 0x279   :  { %v835_v28 = vmul.f32 %v828_v47, %v809_v6  ;;  %v836_v12 = vmul.f32 %v832_v15, %v815_v13  ;;  %v3164_v13 = vld [vmem:[#allocation5_spill] sm:$0xff] }
 0x27a   :  { %v1785_v43 = vpack.c.bf16 %v837_v3, %v833_v50  ;;  %1818 = vmatpush1.bf16.msra.mxu1 %v1817_v5  ;;  %v846_v2 = vpop.permute.xlu1 %845  ;;  %v808_v59 = vpop.permute.xlu0 %807  ;;  %v1783_v53 = vpack.c.bf16 %v838_v4, %v834_v48  ;;  %v916_v5 = vrot.slane %v3160_v19, %v3159_v37 }
 0x27b   :  { %v810_v41 = vsel %vm192_vm8, %v2547_v17, %v808_v59  ;;  %v816_v46 = vsel %vm192_vm8, %v808_v59, %v2543_v9  ;;  %v859_v62 = vsel %vm217_vm9, %v846_v2, %v2549_v18  ;;  %v861_v34 = vsel %vm217_vm9, %v2545_v7, %v846_v2  ;;  %v2786_v9 = vld [vmem:[%s3098_s1 + $0x10] sm:$0xff]  ;;  %v3165_v2 = vld [vmem:[#allocation7_spill] sm:$0xff] }
 0x27c   :  { %v839_v60 = vmul.f32 %v828_v47, %v810_v41  ;;  %v840_v10 = vmul.f32 %v832_v15, %v816_v46  ;;  %1784 = vmatprep.subr.bf16.mxu0 %v1783_v53  ;;  %v876_v14 = vrot.slane %v2786_v9, %v867_v39  ;;  %v881_v29 = vmul.f32 %v868_v25, %v861_v34  ;;  %v3163_v39 = vld [vmem:[#allocation9_spill] sm:$0xff] }
 0x27d   :  { %1786 = vmatpush1.bf16.msra.mxu0 %v1785_v43  ;;  %v882_v54 = vmul.f32 %v872_v8, %v859_v62  ;;  %v920_v47 = vrot.slane %v3161_v44, %v3159_v37  ;;  %v924_v43 = vrot.slane %v3164_v13, %v3159_v37  ;;  %v928_v59 = vrot.slane %v3165_v2, %v3159_v37  ;;  %v3166_v53 = vld [vmem:[#allocation13_spill] sm:$0xff] }
 0x27e   :  { %v1821_v40 = vpack.c.bf16 %v839_v60, %v835_v28  ;;  %v854_v17 = vpop.permute.xlu1 %853  ;;  %v848_v51 = vpop.permute.xlu0 %847  ;;  %v1819_v38 = vpack.c.bf16 %v840_v10, %v836_v12 }
 0x27f   :  { %v860_v22 = vsel %vm217_vm9, %v848_v51, %v3157_v0  ;;  %v862_v63 = vsel %vm217_vm9, %v3158_v11, %v848_v51  ;;  %v857_v36 = vsel %vm217_vm9, %v2549_v18, %v854_v17  ;;  %v863_v42 = vsel %vm217_vm9, %v854_v17, %v2545_v7 }
 0x280   :  { %v885_v23 = vmul.f32 %v868_v25, %v862_v63  ;;  %v886_v26 = vmul.f32 %v872_v8, %v860_v22  ;;  %1820 = vmatprep.subr.bf16.mxu1 %v1819_v38  ;;  %v883_v7 = vmul.f32 %v876_v14, %v857_v36  ;;  %v884_v55 = vmul.f32 %v880_v61, %v863_v42  ;;  %v3167_v8 = vld [vmem:[#allocation12_spill] sm:$0xff]  ;;  %v941_v36 = vld [vmem:[%s3101_s4 + $0x20] sm:$0xff]  ;;  %v944_v42 = vld [vmem:[%s3101_s4 + $0x38] sm:$0xff] }
 0x281   :  { %1822 = vmatpush1.bf16.msra.mxu1 %v1821_v40 }
 0x282   :  { %v1789_v16 = vpack.c.bf16 %v885_v23, %v881_v29  ;;  %v894_v20 = vpop.permute.xlu1 %893  ;;  %v856_v57 = vpop.permute.xlu0 %855  ;;  %v1787_v49 = vpack.c.bf16 %v886_v26, %v882_v54  ;;  %v940_v54 = vld [vmem:[%s3101_s4 + $0x18] sm:$0xff]  ;;  %v939_v23 = vld [vmem:[%s3101_s4 + $0x10] sm:$0xff]  ;;  %v942_v26 = vld [vmem:[%s3101_s4 + $0x28] sm:$0xff] }
 0x283   :  { %v858_v52 = vsel %vm217_vm9, %v3157_v0, %v856_v57  ;;  %v864_v18 = vsel %vm217_vm9, %v856_v57, %v3158_v11  ;;  %v907_v24 = vsel %vm242_vm12, %v894_v20, %v3162_v58  ;;  %v909_v50 = vsel %vm242_vm12, %v3163_v39, %v894_v20  ;;  %v937_v11 = vld [vmem:[%s3101_s4] sm:$0xff] }
 0x284   :  { %v887_v35 = vmul.f32 %v876_v14, %v858_v52  ;;  %v888_v15 = vmul.f32 %v880_v61, %v864_v18  ;;  %1788 = vmatprep.subr.bf16.mxu0 %v1787_v49  ;;  %v929_v46 = vmul.f32 %v916_v5, %v909_v50  ;;  %v930_v28 = vmul.f32 %v920_v47, %v907_v24 }
 0x285   :  { %1790 = vmatpush1.bf16.msra.mxu0 %v1789_v16  ;;  %v943_v16 = vld [vmem:[%s3101_s4 + $0x30] sm:$0xff]  ;;  %v3168_v20 = vmov 0.0  }
 0x286   :  { %v1825_v48 = vpack.c.bf16 %v887_v35, %v883_v7  ;;  %v902_v3 = vpop.permute.xlu1 %901  ;;  %v896_v4 = vpop.permute.xlu0 %895  ;;  %v1823_v6 = vpack.c.bf16 %v888_v15, %v884_v55 }
 0x287   :  { %v908_v25 = vsel %vm242_vm12, %v896_v4, %v3166_v53  ;;  %v910_v41 = vsel %vm242_vm12, %v3167_v8, %v896_v4  ;;  %v905_v10 = vsel %vm242_vm12, %v3162_v58, %v902_v3  ;;  %v911_v62 = vsel %vm242_vm12, %v902_v3, %v3163_v39 }
 0x288   :  { %v933_v12 = vmul.f32 %v916_v5, %v910_v41  ;;  %v934_v60 = vmul.f32 %v920_v47, %v908_v25  ;;  %1824 = vmatprep.subr.bf16.mxu1 %v1823_v6  ;;  %v931_v14 = vmul.f32 %v924_v43, %v905_v10  ;;  %v932_v61 = vmul.f32 %v928_v59, %v911_v62 }
 0x289   :  { %1826 = vmatpush1.bf16.msra.mxu1 %v1825_v48 }
 0x28a   :  { %v1793_v34 = vpack.c.bf16 %v933_v12, %v929_v46  ;;  %v904_v40 = vpop.permute.xlu0 %903  ;;  %v1791_v17 = vpack.c.bf16 %v934_v60, %v930_v28 }
 0x28b   :  { %v906_v51 = vsel %vm242_vm12, %v3166_v53, %v904_v40  ;;  %v912_v38 = vsel %vm242_vm12, %v904_v40, %v3167_v8 }
 0x28c   :  { %v935_v0 = vmul.f32 %v924_v43, %v906_v51  ;;  %v936_v22 = vmul.f32 %v928_v59, %v912_v38  ;;  %1792 = vmatprep.subr.bf16.mxu0 %v1791_v17 }
 0x28d   :  { %1794 = vmatpush1.bf16.msra.mxu0 %v1793_v34 }
 0x28e   :  { %v1829_v63 = vpack.c.bf16 %v935_v0, %v931_v14  ;;  %v1827_v29 = vpack.c.bf16 %v936_v22, %v932_v61 }
 0x290   :  { %1047 = vmatmul.mubr.f32.vlgmr.msra.gmra.mrb[4].mxu0 %v937_v11  ;;  %1828 = vmatprep.subr.bf16.mxu1 %v1827_v29 }
 0x291   :  { %1830 = vmatpush1.bf16.msra.mxu1 %v1829_v63  ;;  %1732 = vmatprep.mubr.msk.f32.mxu0 %vm969_vm7, %v940_v54 }
 0x294   :  { %1053 = vmatmul.mubr.f32.gmra.mrb[6].mxu0 %v939_v23  ;;  %1136 = vmatmul.mubr.f32.vlgmr.msra.gmra.mrb[4].mxu1 %v937_v11 }
 0x295   :  { %1733 = vmatprep.mubr.msk.f32.mxu0 %vm969_vm7, %v942_v26  ;;  %1736 = vmatprep.mubr.msk.f32.mxu1 %vm969_vm7, %v940_v54 }
 0x297   :  { %v952_v19 = vpop.permute.xlu1 %951 }
 0x298   :  { %1059 = vmatmul.mubr.f32.gmra.mrb[8].mxu0 %v941_v36  ;;  %1142 = vmatmul.mubr.f32.gmra.mrb[6].mxu1 %v939_v23 }
 0x299   :  { %1734 = vmatprep.mubr.msk.f32.mxu0 %vm969_vm7, %v944_v42  ;;  %1737 = vmatprep.mubr.msk.f32.mxu1 %vm969_vm7, %v942_v26 }
 0x29b   :  { %v957_v5 = vpop.permute.xlu0 %956  ;;  %v962_v53 = vpop.permute.xlu1 %961 }
 0x29c   :  { %1065 = vmatmul.mubr.f32.gmra.mrb[10].mxu0 %v943_v16  ;;  %1148 = vmatmul.mubr.f32.gmra.mrb[8].mxu1 %v941_v36 }
 0x29d   :  { %1738 = vmatprep.mubr.msk.f32.mxu1 %vm969_vm7, %v944_v42  ;;  %1249 = vmatprep.mubr.f32.mxu0 %v3168_v20 }
 0x29f   :  { %v967_v41 = vpop.permute.xlu0 %966 }
 0x2a0   :  { %1154 = vmatmul.mubr.f32.gmra.mrb[10].mxu1 %v943_v16 }
 0x2a1   :  { %1326 = vmatprep.mubr.f32.mxu1 %v3168_v20 }
 0x363   :  { %v1048_v57 = vpop.f32.mrb[4].mxu0 }
 0x364   :  { %v1050_v49 = vpop.f32.mrb[5].mxu0  ;;  %v1049_v44 = vadd.f32 %v1048_v57, %v952_v19 }
 0x365   :  { %v1051_v47 = vadd.f32 %v1050_v49, %v952_v19 }
 0x366   :  { %v1160_v58 = vmax.f32 %v1049_v44, 0.0 }
 0x367   :  { %v1054_v52 = vpop.f32.mrb[6].mxu0  ;;  %v1137_v18 = vpop.f32.mrb[4].mxu1  ;;  %v1161_v50 = vmax.f32 %v1051_v47, 0.0 }
 0x368   :  { %v1055_v7 = vadd.f32 %v1054_v52, %v957_v5  ;;  %v1056_v55 = vpop.f32.mrb[7].mxu0  ;;  %v1139_v35 = vpop.f32.mrb[5].mxu1  ;;  %v1138_v39 = vadd.f32 %v1137_v18, %v952_v19  ;;  %v1176_v18 = vld [vmem:[%s3103_s6] sm:$0xff] }
 0x369   :  { %v1057_v15 = vadd.f32 %v1056_v55, %v957_v5  ;;  %v1140_v3 = vadd.f32 %v1139_v35, %v952_v19  ;;  %v1177_v55 = vld [vmem:[%s3103_s6 + $0x8] sm:$0x1] }
 0x36a   :  { %v1164_v24 = vmax.f32 %v1055_v7, 0.0  ;;  %v1162_v46 = vmax.f32 %v1138_v39, 0.0 }
 0x36b   :  { %v1165_v48 = vmax.f32 %v1057_v15, 0.0  ;;  %v1060_v4 = vpop.f32.mrb[8].mxu0  ;;  %v1143_v6 = vpop.f32.mrb[6].mxu1  ;;  %v1163_v60 = vmax.f32 %v1140_v3, 0.0 }
 0x36c   :  { %v1833_v13 = vpack.c.bf16 %v1164_v24, %v1160_v58  ;;  %v1144_v43 = vadd.f32 %v1143_v6, %v957_v5  ;;  %v1062_v2 = vpop.f32.mrb[9].mxu0  ;;  %v1145_v59 = vpop.f32.mrb[7].mxu1  ;;  %v1061_v28 = vadd.f32 %v1060_v4, %v962_v53 }
 0x36d   :  { %v1831_v25 = vpack.c.bf16 %v1165_v48, %v1161_v50  ;;  %v1146_v8 = vadd.f32 %v1145_v59, %v957_v5  ;;  %v1063_v10 = vadd.f32 %v1062_v2, %v962_v53 }
 0x36e   :  { %v1166_v12 = vmax.f32 %v1144_v43, 0.0  ;;  %v1168_v22 = vmax.f32 %v1061_v28, 0.0 }
 0x36f   :  { %v1167_v62 = vmax.f32 %v1146_v8, 0.0  ;;  %v1066_v34 = vpop.f32.mrb[10].mxu0  ;;  %v1149_v40 = vpop.f32.mrb[8].mxu1  ;;  %1832 = vmatprep.subr.bf16.mxu0 %v1831_v25  ;;  %v1169_v29 = vmax.f32 %v1063_v10, 0.0 }
 0x370   :  { %v1841_v17 = vpack.c.bf16 %v1166_v12, %v1162_v46  ;;  %v1067_v51 = vadd.f32 %v1066_v34, %v967_v41  ;;  %v1068_v38 = vpop.f32.mrb[11].mxu0  ;;  %v1151_v14 = vpop.f32.mrb[9].mxu1  ;;  %1834 = vmatpush1.bf16.msra.mxu0 %v1833_v13  ;;  %v1150_v63 = vadd.f32 %v1149_v40, %v962_v53 }
 0x371   :  { %v1839_v61 = vpack.c.bf16 %v1167_v62, %v1163_v60  ;;  %v1069_v0 = vadd.f32 %v1068_v38, %v967_v41  ;;  %v1152_v23 = vadd.f32 %v1151_v14, %v962_v53 }
 0x372   :  { %v1172_v11 = vmax.f32 %v1067_v51, 0.0  ;;  %v1170_v19 = vmax.f32 %v1150_v63, 0.0 }
 0x373   :  { %v1173_v54 = vmax.f32 %v1069_v0, 0.0  ;;  %v1155_v26 = vpop.f32.mrb[10].mxu1  ;;  %1840 = vmatprep.subr.bf16.mxu1 %v1839_v61  ;;  %v1171_v44 = vmax.f32 %v1152_v23, 0.0  ;;  %v2945_v0 = vpop.permute.xlu1 %1650 }
 0x374   :  { %v1837_v36 = vpack.c.bf16 %v1172_v11, %v1168_v22  ;;  %v1156_v42 = vadd.f32 %v1155_v26, %v967_v41  ;;  %v1157_v16 = vpop.f32.mrb[11].mxu1  ;;  %1842 = vmatpush1.bf16.msra.mxu1 %v1841_v17 }
 0x375   :  { %v1835_v57 = vpack.c.bf16 %v1173_v54, %v1169_v29  ;;  %v1158_v49 = vadd.f32 %v1157_v16, %v967_v41 }
 0x376   :  { %v1174_v5 = vmax.f32 %v1156_v42, 0.0 }
 0x377   :  { %v1175_v47 = vmax.f32 %v1158_v49, 0.0  ;;  %1836 = vmatprep.subr.bf16.mxu0 %v1835_v57 }
 0x378   :  { %v1845_v52 = vpack.c.bf16 %v1174_v5, %v1170_v19  ;;  %1838 = vmatpush1.bf16.msra.mxu0 %v1837_v36 }
 0x379   :  { %v1843_v7 = vpack.c.bf16 %v1175_v47, %v1171_v44 }
 0x37b   :  { %1739 = vmatmul.mubr.msk.f32.vlgmr.msra.gmra.mrb[12].mxu0 %vm1178_vm10, %v1176_v18  ;;  %1844 = vmatprep.subr.bf16.mxu1 %v1843_v7 }
 0x37c   :  { %1846 = vmatpush1.bf16.msra.mxu1 %v1845_v52  ;;  %1255 = vmatprep.mubr.f32.mxu0 %v3168_v20 }
 0x37f   :  { %1741 = vmatmul.mubr.msk.f32.vlgmr.msra.gmra.mrb[12].mxu1 %vm1178_vm10, %v1176_v18  ;;  %1740 = vmatmul.mubr.msk.f32.gmra.mrb[14].mxu0 %vm1178_vm10, %v1177_v55 }
 0x380   :  { %1332 = vmatprep.mubr.f32.mxu1 %v3168_v20 }
 0x383   :  { %1742 = vmatmul.mubr.msk.f32.gmra.mrb[14].mxu1 %vm1178_vm10, %v1177_v55 }
 0x44e   :  { %v2877_v35 = vpop.f32.mrb[12].mxu0 }
 0x44f   :  { %1339 = vrot.lane.b32.xlu1 %v2877_v35, %s1887_s30  ;;  %v2881_v15 = vpop.f32.mrb[13].mxu0  ;;  %v1375_v50 = vrot.slane %v2877_v35, 1  ;;  %v1415_v43 = vrot.slane %v2877_v35, 2  ;;  %v1455_v25 = vrot.slane %v2877_v35, 3  ;;  %v1495_v28 = vrot.slane %v2877_v35, 5 }
 0x450   :  { %1341 = vrot.lane.b32.xlu0 %v2881_v15, %s1887_s30  ;;  %v1376_v48 = vrot.slane %v2881_v15, 1  ;;  %v1416_v2 = vrot.slane %v2881_v15, 2  ;;  %v1456_v8 = vrot.slane %v2881_v15, 3  ;;  %v1496_v12 = vrot.slane %v2881_v15, 5 }
 0x451   :  { %v1535_v62 = vrot.slane %v2877_v35, 6  ;;  %v1536_v34 = vrot.slane %v2881_v15, 6  ;;  %v1575_v51 = vrot.slane %v2877_v35, 7  ;;  %v1576_v38 = vrot.slane %v2881_v15, 7 }
 0x452   :  { %v2885_v58 = vpop.f32.mrb[12].mxu1  ;;  %v1257_v24 = vpop.f32.mrb[14].mxu0 }
 0x453   :  { %v2887_v39 = vpop.f32.mrb[13].mxu1  ;;  %1343 = vrot.lane.b32.xlu1 %v2885_v58, %s1887_s30  ;;  %v1259_v20 = vpop.f32.mrb[15].mxu0  ;;  %v1377_v6 = vrot.slane %v2885_v58, 1  ;;  %v1417_v59 = vrot.slane %v2885_v58, 2  ;;  %v1457_v41 = vrot.slane %v2885_v58, 3  ;;  %v1497_v60 = vrot.slane %v2885_v58, 5 }
 0x454   :  { %1345 = vrot.lane.b32.xlu0 %v2887_v39, %s1887_s30  ;;  %v1378_v13 = vrot.slane %v2887_v39, 1  ;;  %v1418_v53 = vrot.slane %v2887_v39, 2  ;;  %v1458_v46 = vrot.slane %v2887_v39, 3  ;;  %v1498_v10 = vrot.slane %v2887_v39, 5 }
 0x455   :  { %v1537_v40 = vrot.slane %v2885_v58, 6  ;;  %v1538_v17 = vrot.slane %v2887_v39, 6  ;;  %v1577_v14 = vrot.slane %v2885_v58, 7  ;;  %v1578_v61 = vrot.slane %v2887_v39, 7 }
 0x456   :  { %v1334_v3 = vpop.f32.mrb[14].mxu1 }
 0x457   :  { %1383 = vrot.lane.b32.xlu1 %v1375_v50, %s1885_s29  ;;  %v1336_v4 = vpop.f32.mrb[15].mxu1 }
 0x458   :  { %1385 = vrot.lane.b32.xlu0 %v1376_v48, %s1885_s29 }
 0x45b   :  { %1387 = vrot.lane.b32.xlu1 %v1377_v6, %s1885_s29 }
 0x45c   :  { %1389 = vrot.lane.b32.xlu0 %v1378_v13, %s1885_s29 }
 0x45f   :  { %1423 = vrot.lane.b32.xlu1 %v1415_v43, %s1886_s0 }
 0x460   :  { %1425 = vrot.lane.b32.xlu0 %v1416_v2, %s1886_s0 }
 0x463   :  { %1427 = vrot.lane.b32.xlu1 %v1417_v59, %s1886_s0 }
 0x464   :  { %1429 = vrot.lane.b32.xlu0 %v1418_v53, %s1886_s0 }
 0x467   :  { %1463 = vrot.lane.b32.xlu1 %v1455_v25, %s1888_s9 }
 0x468   :  { %1465 = vrot.lane.b32.xlu0 %v1456_v8, %s1888_s9  ;;  %v3171_v8 = vrot.slane %v2066_v30, 1 }
 0x46b   :  { %1467 = vrot.lane.b32.xlu1 %v1457_v41, %s1888_s9 }
 0x46c   :  { %1469 = vrot.lane.b32.xlu0 %v1458_v46, %s1888_s9  ;;  %v3172_v46 = vrot.slane %v2071_v31, 1 }
 0x46f   :  { %1503 = vrot.lane.b32.xlu1 %v1495_v28, %s1889_s10 }
 0x470   :  { %1505 = vrot.lane.b32.xlu0 %v1496_v12, %s1889_s10 }
 0x473   :  { %1507 = vrot.lane.b32.xlu1 %v1497_v60, %s1889_s10 }
 0x474   :  { %1509 = vrot.lane.b32.xlu0 %v1498_v10, %s1889_s10 }
 0x477   :  { %1543 = vrot.lane.b32.xlu1 %v1535_v62, %s1890_s11 }
 0x478   :  { %1545 = vrot.lane.b32.xlu0 %v1536_v34, %s1890_s11 }
 0x47b   :  { %1547 = vrot.lane.b32.xlu1 %v1537_v40, %s1890_s11 }
 0x47c   :  { %1549 = vrot.lane.b32.xlu0 %v1538_v17, %s1890_s11  ;;  %v3173_v17 = vrot.slane %v2076_v32, 2 }
 0x47f   :  { %1583 = vrot.lane.b32.xlu1 %v1575_v51, %s1891_s12 }
 0x480   :  { %1585 = vrot.lane.b32.xlu0 %v1576_v38, %s1891_s12  ;;  %v3174_v38 = vrot.slane %v2081_v33, 2 }
 0x483   :  { %1587 = vrot.lane.b32.xlu1 %v1577_v14, %s1891_s12 }
 0x484   :  { %1589 = vrot.lane.b32.xlu0 %v1578_v61, %s1891_s12 }
 0x487   :  { %1617 = vrot.lane.b32.xlu1 %v1259_v20, %s1893_s13 }
 0x488   :  { %1615 = vrot.lane.b32.xlu0 %v1257_v24, %s1893_s13 }
 0x48b   :  { %1621 = vrot.lane.b32.xlu1 %v1336_v4, %s1893_s13 }
 0x48c   :  { %1619 = vrot.lane.b32.xlu0 %v1334_v3, %s1893_s13 }
 0x4c1   :  { %v1340_v22 = vpop.permute.xlu1 %1339 }
 0x4c2   :  { %v1342_v11 = vpop.permute.xlu0 %1341 }
 0x4c3   :  { %v1349_v52 = vsel %vm71_vm2, %v1340_v22, %v1342_v11 }
 0x4c4   :  { %v1352_v20 = vmul.f32 %v2768_v45, %v1349_v52  ;;  %v3169_v45 = vrot.slane %v2076_v32, 1 }
 0x4c5   :  { %v1344_v63 = vpop.permute.xlu1 %1343 }
 0x4c6   :  { %v1346_v29 = vpop.permute.xlu0 %1345  ;;  %v1348_v18 = vsel %vm71_vm2, %v1342_v11, %v1344_v63  ;;  %v1360_v10 = vrot.slane %v1352_v20, 4 }
 0x4c7   :  { %v1350_v7 = vsel %vm71_vm2, %v1346_v29, %v1340_v22  ;;  %v1347_v55 = vsel %vm71_vm2, %v1344_v63, %v1346_v29  ;;  %v1353_v50 = vmul.f32 %v2786_v9, %v1348_v18  ;;  %v3175_v63 = vrot.slane %v2066_v30, 2 }
 0x4c8   :  { %v1351_v48 = vmul.f32 %v2762_v21, %v1350_v7  ;;  %v1354_v6 = vmul.f32 %v2743_v56, %v1347_v55  ;;  %v3170_v56 = vrot.slane %v2081_v33, 1  ;;  %v3176_v18 = vrot.slane %v2071_v31, 2 }
 0x4c9   :  { %v1384_v54 = vpop.permute.xlu1 %1383  ;;  %v1361_v62 = vrot.slane %v1353_v50, 4 }
 0x4ca   :  { %v1386_v23 = vpop.permute.xlu0 %1385  ;;  %v1359_v34 = vrot.slane %v1351_v48, 4  ;;  %v1362_v40 = vrot.slane %v1354_v6, 4 }
 0x4cb   :  { %v1393_v3 = vsel %vm88_vm0, %v1384_v54, %v1386_v23  ;;  %v1369_v52 = vadd.f32 %v1361_v62, %v2885_v58  ;;  %v3181_v62 = vrot.slane %v2066_v30, 5 }
 0x4cc   :  { %v1396_v9 = vmul.f32 %v1393_v3, %v3169_v45  ;;  %v1367_v55 = vadd.f32 %v1359_v34, %v2877_v35  ;;  %v1370_v20 = vadd.f32 %v1362_v40, %v2887_v39  ;;  %v3003_v3 = vrot.slane %v2945_v0, %v3159_v37 }
 0x4cd   :  { %v1388_v26 = vpop.permute.xlu1 %1387 }
 0x4ce   :  { %v1390_v36 = vpop.permute.xlu0 %1389  ;;  %v1392_v13 = vsel %vm88_vm0, %v1386_v23, %v1388_v26  ;;  %v1404_v11 = vrot.slane %v1396_v9, 4 }
 0x4cf   :  { %v1391_v43 = vsel %vm88_vm0, %v1388_v26, %v1390_v36  ;;  %v1394_v2 = vsel %vm88_vm0, %v1390_v36, %v1384_v54  ;;  %v1397_v25 = vmul.f32 %v1392_v13, %v3170_v56 }
 0x4d0   :  { %v1395_v41 = vmul.f32 %v1394_v2, %v3171_v8  ;;  %v1398_v28 = vmul.f32 %v1391_v43, %v3172_v46 }
 0x4d1   :  { %v1424_v42 = vpop.permute.xlu1 %1423  ;;  %v1405_v23 = vrot.slane %v1397_v25, 4 }
 0x4d2   :  { %v1426_v16 = vpop.permute.xlu0 %1425  ;;  %v1403_v26 = vrot.slane %v1395_v41, 4  ;;  %v1406_v36 = vrot.slane %v1398_v28, 4 }
 0x4d3   :  { %v1433_v21 = vsel %vm117_vm1, %v1424_v42, %v1426_v16  ;;  %v1413_v43 = vadd.f32 %v1405_v23, %v1369_v52 }
 0x4d4   :  { %v1436_v51 = vmul.f32 %v1433_v21, %v3173_v17  ;;  %v1411_v2 = vadd.f32 %v1403_v26, %v1367_v55  ;;  %v1414_v45 = vadd.f32 %v1406_v36, %v1370_v20  ;;  %v3185_v26 = vrot.slane %v2071_v31, 5 }
 0x4d5   :  { %v1428_v57 = vpop.permute.xlu1 %1427 }
 0x4d6   :  { %v1430_v49 = vpop.permute.xlu0 %1429  ;;  %v1432_v59 = vsel %vm117_vm1, %v1426_v16, %v1428_v57  ;;  %v1368_v16 = vadd.f32 %v1360_v10, %v2881_v15  ;;  %v1444_v50 = vrot.slane %v1436_v51, 4 }
 0x4d7   :  { %v1434_v12 = vsel %vm117_vm1, %v1430_v49, %v1424_v42  ;;  %v1437_v14 = vmul.f32 %v1432_v59, %v3174_v38  ;;  %v1431_v61 = vsel %vm117_vm1, %v1428_v57, %v1430_v49  ;;  %v3177_v57 = vrot.slane %v2076_v32, 3 }
 0x4d8   :  { %v1435_v29 = vmul.f32 %v1434_v12, %v3175_v63  ;;  %v1438_v7 = vmul.f32 %v1431_v61, %v3176_v18  ;;  %v1412_v6 = vadd.f32 %v1404_v11, %v1368_v16  ;;  %v3180_v12 = vrot.slane %v2071_v31, 3 }
 0x4d9   :  { %v1464_v19 = vpop.permute.xlu1 %1463  ;;  %v1445_v48 = vrot.slane %v1437_v14, 4  ;;  %v3182_v38 = vrot.slane %v2076_v32, 5  ;;  %v3183_v11 = vrot.slane %v2081_v33, 5 }
 0x4da   :  { %v1466_v5 = vpop.permute.xlu0 %1465  ;;  %v1443_v15 = vrot.slane %v1435_v29, 4  ;;  %v1446_v39 = vrot.slane %v1438_v7, 4  ;;  %v1452_v0 = vadd.f32 %v1444_v50, %v1412_v6  ;;  %v3184_v29 = vrot.slane %v2066_v30, 6 }
 0x4db   :  { %v1473_v22 = vsel %vm142_vm3, %v1464_v19, %v1466_v5  ;;  %v1453_v56 = vadd.f32 %v1445_v48, %v1413_v43  ;;  %v3188_v48 = vrot.slane %v2071_v31, 6 }
 0x4dc   :  { %v1476_v49 = vmul.f32 %v1473_v22, %v3177_v57  ;;  %v1451_v41 = vadd.f32 %v1443_v15, %v1411_v2  ;;  %v1454_v51 = vadd.f32 %v1446_v39, %v1414_v45  ;;  %v3190_v39 = vrot.slane %v2076_v32, 7 }
 0x4dd   :  { %v1468_v44 = vpop.permute.xlu1 %1467 }
 0x4de   :  { %v1470_v47 = vpop.permute.xlu0 %1469  ;;  %v1472_v35 = vsel %vm142_vm3, %v1466_v5, %v1468_v44  ;;  %v1484_v21 = vrot.slane %v1476_v49, 4  ;;  %v3179_v5 = vrot.slane %v2081_v33, 3  ;;  %v3187_v49 = vrot.slane %v2066_v30, 7 }
 0x4df   :  { %v1474_v58 = vsel %vm142_vm3, %v1470_v47, %v1464_v19  ;;  %v1471_v59 = vsel %vm142_vm3, %v1468_v44, %v1470_v47  ;;  %v3178_v19 = vrot.slane %v2066_v30, 3  ;;  %v3189_v30 = vrot.slane %v2081_v33, 6 }
 0x4e0   :  { %v1477_v46 = vmul.f32 %v1472_v35, %v3179_v5  ;;  %v1478_v10 = vmul.f32 %v1471_v59, %v3180_v12  ;;  %v3191_v59 = vrot.slane %v2071_v31, 7  ;;  %v3192_v5 = vrot.slane %v2081_v33, 7  ;;  %v1881_v31 = vld [vmem:[%s3098_s1 + $0x20] sm:$0x1] }
 0x4e1   :  { %v2955_v24 = vpop.permute.xlu1 %1503  ;;  %v1475_v25 = vmul.f32 %v1474_v58, %v3178_v19 }
 0x4e2   :  { %v1506_v4 = vpop.permute.xlu0 %1505  ;;  %v1486_v7 = vrot.slane %v1478_v10, 4 }
 0x4e3   :  { %v1513_v37 = vsel %vm167_vm4, %v2955_v24, %v1506_v4  ;;  %v1483_v22 = vrot.slane %v1475_v25, 4 }
 0x4e4   :  { %v1515_v34 = vmul.f32 %v1513_v37, %v3181_v62 }
 0x4e5   :  { %v1508_v53 = vpop.permute.xlu1 %1507 }
 0x4e6   :  { %v1510_v60 = vpop.permute.xlu0 %1509  ;;  %v1512_v8 = vsel %vm167_vm4, %v1506_v4, %v1508_v53  ;;  %v1523_v57 = vrot.slane %v1515_v34, 4 }
 0x4e7   :  { %v1511_v28 = vsel %vm167_vm4, %v1508_v53, %v1510_v60  ;;  %v1514_v4 = vsel %vm167_vm4, %v1510_v60, %v2955_v24  ;;  %v1492_v53 = vadd.f32 %v1484_v21, %v1452_v0  ;;  %v1516_v14 = vmul.f32 %v1512_v8, %v3182_v38 }
 0x4e8   :  { %v1517_v63 = vmul.f32 %v1511_v28, %v3183_v11  ;;  %v1485_v60 = vrot.slane %v1477_v46, 4  ;;  %v1518_v36 = vmul.f32 %v1514_v4, %v3185_v26  ;;  %v1494_v28 = vadd.f32 %v1486_v7, %v1454_v51  ;;  %v1882_v11 = vld [vmem:[%s3098_s1 + $0x38] sm:$0x1]  ;;  %v1883_v26 = vld [vmem:[%s3098_s1 + $0x28] sm:$0x1] }
 0x4e9   :  { %v1544_v54 = vpop.permute.xlu1 %1543  ;;  %v1524_v50 = vrot.slane %v1516_v14, 4 }
 0x4ea   :  { %v1546_v42 = vpop.permute.xlu0 %1545  ;;  %v1525_v43 = vrot.slane %v1517_v63, 4  ;;  %v1526_v35 = vrot.slane %v1518_v36, 4  ;;  %v1493_v19 = vadd.f32 %v1485_v60, %v1453_v56 }
 0x4eb   :  { %v1553_v44 = vsel %vm192_vm8, %v1544_v54, %v1546_v42 }
 0x4ec   :  { %v1555_v23 = vmul.f32 %v1553_v44, %v3184_v29  ;;  %v1532_v44 = vadd.f32 %v1524_v50, %v1492_v53  ;;  %v1533_v10 = vadd.f32 %v1525_v43, %v1493_v19  ;;  %v1534_v34 = vadd.f32 %v1526_v35, %v1494_v28 }
 0x4ed   :  { %v1548_v13 = vpop.permute.xlu1 %1547 }
 0x4ee   :  { %v1550_v9 = vpop.permute.xlu0 %1549  ;;  %v1552_v40 = vsel %vm192_vm8, %v1546_v42, %v1548_v13  ;;  %v3186_v42 = vrot.slane %v2076_v32, 6  ;;  %v1563_v2 = vrot.slane %v1555_v23, 4 }
 0x4ef   :  { %v1554_v24 = vsel %vm192_vm8, %v1550_v9, %v1544_v54  ;;  %v1551_v52 = vsel %vm192_vm8, %v1548_v13, %v1550_v9  ;;  %v1491_v13 = vadd.f32 %v1483_v22, %v1451_v41 }
 0x4f0   :  { %v1556_v16 = vmul.f32 %v1552_v40, %v3186_v42  ;;  %v1558_v6 = vmul.f32 %v1554_v24, %v3188_v48  ;;  %v1557_v45 = vmul.f32 %v1551_v52, %v3189_v30  ;;  %v1884_v42 = vld [vmem:[%s3098_s1 + $0x30] sm:$0x1] }
 0x4f1   :  { %v1584_v47 = vpop.permute.xlu1 %1583  ;;  %v1531_v25 = vadd.f32 %v1523_v57, %v1491_v13 }
 0x4f2   :  { %v1586_v17 = vpop.permute.xlu0 %1585  ;;  %v1564_v9 = vrot.slane %v1556_v16, 4  ;;  %v1565_v62 = vrot.slane %v1557_v45, 4 }
 0x4f3   :  { %v1593_v61 = vsel %vm217_vm9, %v1584_v47, %v1586_v17  ;;  %v1571_v32 = vadd.f32 %v1563_v2, %v1531_v25 }
 0x4f4   :  { %v1595_v55 = vmul.f32 %v1593_v61, %v3187_v49  ;;  %v1572_v4 = vadd.f32 %v1564_v9, %v1532_v44  ;;  %v1573_v24 = vadd.f32 %v1565_v62, %v1533_v10 }
 0x4f5   :  { %v1588_v18 = vpop.permute.xlu1 %1587 }
 0x4f6   :  { %v1592_v20 = vsel %vm217_vm9, %v1586_v17, %v1588_v18  ;;  %v1590_v54 = vpop.permute.xlu0 %1589  ;;  %v1603_v8 = vrot.slane %v1595_v55, 4 }
 0x4f7   :  { %v1591_v15 = vsel %vm217_vm9, %v1588_v18, %v1590_v54  ;;  %v1594_v58 = vsel %vm217_vm9, %v1590_v54, %v1584_v47  ;;  %v1596_v21 = vmul.f32 %v1592_v20, %v3190_v39  ;;  %v1566_v47 = vrot.slane %v1558_v6, 4 }
 0x4f8   :  { %v1598_v37 = vmul.f32 %v1594_v58, %v3191_v59  ;;  %v1597_v41 = vmul.f32 %v1591_v15, %v3192_v5  ;;  %v1611_v38 = vadd.f32 %v1603_v8, %v1571_v32  ;;  %v3193_v32 = vlaneseq }
 0x4f9   :  { %v1618_v0 = vpop.permute.xlu1 %1617  ;;  %v1604_v40 = vrot.slane %v1596_v21, 4  ;;  %v1574_v22 = vadd.f32 %v1566_v47, %v1534_v34 }
 0x4fa   :  { %v1616_v46 = vpop.permute.xlu0 %1615  ;;  %v1606_v33 = vrot.slane %v1598_v37, 4  ;;  %v1605_v51 = vrot.slane %v1597_v41, 4  ;;  %vm1716_vm0 = vcmp.lt.s32.totalorder %v3193_v32, 512 }
 0x4fb   :  { %v1625_v12 = vsel %vm242_vm12, %v1616_v46, %v1618_v0  ;;  %v1612_v52 = vadd.f32 %v1604_v40, %v1572_v4 }
 0x4fc   :  { %v1627_v56 = vmul.f32 %v1881_v31, %v1625_v12  ;;  %v1614_v18 = vadd.f32 %v1606_v33, %v1574_v22  ;;  %v1613_v57 = vadd.f32 %v1605_v51, %v1573_v24 }
 0x4fd   :  { %v1622_v17 = vpop.permute.xlu1 %1621 }
 0x4fe   :  { %v1635_v53 = vrot.slane %v1627_v56, 4  ;;  %v1626_v14 = vsel %vm242_vm12, %v1622_v17, %v1616_v46  ;;  %v1620_v61 = vpop.permute.xlu0 %1619 }
 0x4ff   :  { %v1630_v63 = vmul.f32 %v1882_v11, %v1626_v14  ;;  %v1623_v29 = vsel %vm242_vm12, %v1620_v61, %v1622_v17  ;;  %v1624_v23 = vsel %vm242_vm12, %v1618_v0, %v1620_v61  ;;  %v1896_v0 = vmov 1966171168  }
 0x500   :  { %v1643_v60 = vadd.f32 %v1635_v53, %v1611_v38  ;;  %v1628_v36 = vmul.f32 %v1883_v26, %v1624_v23  ;;  %v1629_v16 = vmul.f32 %v1884_v42, %v1623_v29  ;;  %v1692_v19 = vunpack.c.l.s4 %v1896_v0 }
 0x501   :  { %v1638_v7 = vrot.slane %v1630_v63, 4 }
 0x502   :  { %v1657_v49 = vadd.f32 %v3003_v3, %v1643_v60  ;;  %v1636_v27 = vrot.slane %v1628_v36, 4  ;;  %v1637_v55 = vrot.slane %v1629_v16, 4 }
 0x503   :  { %v1646_v20 = vadd.f32 %v1638_v7, %v1614_v18 }
 0x504   :  { %v1743_v54 = vmul.f32 -1.442695, %v1657_v49  ;;  %v1644_v50 = vadd.f32 %v1636_v27, %v1612_v52  ;;  %v1645_v48 = vadd.f32 %v1637_v55, %v1613_v57 }
 0x505   :  { %v1660_v6 = vadd.f32 %v3003_v3, %v1646_v20 }
 0x506   :  { %1861 = vpow2.f32 %v1743_v54  ;;  %v1658_v15 = vadd.f32 %v3003_v3, %v1644_v50  ;;  %v1659_v58 = vadd.f32 %v3003_v3, %v1645_v48  ;;  %v1693_v3 = vunpack.c.0.s8 %v1692_v19 }
 0x507   :  { %v1746_v13 = vmul.f32 -1.442695, %v1660_v6 }
 0x508   :  { %v1744_v43 = vmul.f32 -1.442695, %v1658_v15  ;;  %v1745_v2 = vmul.f32 -1.442695, %v1659_v58  ;;  %v1696_v5 = vsub.s32 %v1693_v3, %v1943_v1 }
 0x509   :  { %1863 = vpow2.f32 %v1746_v13 }
 0x50a   :  { %1865 = vpow2.f32 %v1744_v43 }
 0x50b   :  { %1867 = vpow2.f32 %v1745_v2 }
 0x510   :  { %v1862_v30 = vpop.eup %1861 }
 0x511   :  { %v1673_v45 = vadd.f32 1.0, %v1862_v30 }
 0x513   :  { %v1864_v35 = vpop.eup %1863  ;;  %1869 = vrcp.f32 %v1673_v45 }
 0x514   :  { %v1866_v9 = vpop.eup %1865  ;;  %v1676_v39 = vadd.f32 1.0, %v1864_v35 }
 0x515   :  { %v1868_v21 = vpop.eup %1867  ;;  %v1674_v59 = vadd.f32 1.0, %v1866_v9 }
 0x516   :  { %1871 = vrcp.f32 %v1676_v39  ;;  %v1675_v37 = vadd.f32 1.0, %v1868_v21 }
 0x517   :  { %1873 = vrcp.f32 %v1674_v59 }
 0x518   :  { %1875 = vrcp.f32 %v1675_v37 }
 0x51d   :  { %v1870_v25 = vpop.eup %1869 }
 0x520   :  { %v1872_v8 = vpop.eup %1871 }
 0x521   :  { %v1874_v41 = vpop.eup %1873 }
 0x522   :  { %v1876_v46 = vpop.eup %1875  ;;  %v1689_v28 = vcombine.high %v1870_v25, %v1874_v41 }
 0x523   :  { %v1690_v44 = vcombine.high %v1876_v46, %v1872_v8 }
 0x524   :  { %v1697_v47 = vrot.slane %v1689_v28, %v1696_v5 }
 0x525   :  { %v1704_v12 = vrot.slane %v1690_v44, %v1696_v5 }
 0x527   :  { %v1705_v10 = vcombine.low %v1697_v47, %v1704_v12 }
 0x529   :  { %v1712_v62 = vrot.slane %v1705_v10, %v1696_v5 }
 0x52b   :  { %1718 = vst.msk [vmem:[%s3104_s8] sm:$0xf] %vm1716_vm0, %v1712_v62 }

</bundles_post_ra>
